<compile_context>
chip_gen: v6e
topology: v6e:2x2x1
jax: 0.10.0
libtpu: 0.0.40
codegen_flags: <defaults>
</compile_context>

<pallas_src>
import jax
import jax.numpy as jnp
from jax.experimental import pallas as pl
from jax.experimental.pallas import tpu as pltpu


# ---------------------------------------------------------------------------
# Model hyper-parameters (small, consistent with the module's forward)
# ---------------------------------------------------------------------------
BATCH = 2
CHANNELS = 1
IMG_H = 16          # -> LSTM1 input feature size D = channels * image_height
IMG_W = 8           # -> sequence length S
HIDDEN = 32         # LSTM hidden size
NUM_CLASSES = 6
EPS = 1e-5

D = CHANNELS * IMG_H
S = IMG_W
H = HIDDEN
C_PAD = 128                       # lane-dense padded classifier width

# ---- packed parameter buffer A (lane width 4H == C_PAD == 128) ----
ROW_WIH1 = 0                      # (D, 4H)   LSTM1 input weights
ROW_WHH1 = ROW_WIH1 + D           # (H, 4H)   LSTM1 recurrent weights
ROW_B1 = ROW_WHH1 + H             # (1, 4H)   LSTM1 bias (b_ih + b_hh), 8-row pad
ROW_BFC = ROW_B1 + 8              # (1, 128)  classifier bias (zero-padded)
A_ROWS = ROW_BFC + 8              # 64

# ---- packed parameter buffer B (lane width 8H == 256) ----
ROW_WIH2 = 0                      # (2H, 8H)  fused bidir LSTM2 input weights
ROW_WHH2 = ROW_WIH2 + 2 * H       # (2H, 8H)  fused block-diag recurrent weights
ROW_B2 = ROW_WHH2 + 2 * H         # (1, 8H)   fused biases, 8-row pad
B_ROWS = ROW_B2 + 8               # 136

# ---- advisory cost estimate for XLA scheduling around the custom call ----
_FLOPS = 2 * (S * BATCH * D * 4 * H          # hoisted LSTM1 input projection
              + S * BATCH * H * 4 * H        # LSTM1 recurrent matmuls
              + S * BATCH * 2 * H * 8 * H    # hoisted fused LSTM2 projection
              + S * BATCH * 2 * H * 8 * H    # LSTM2 recurrent matmuls
              + BATCH * S * 2 * H * C_PAD)   # classifier
_TRANSC = S * BATCH * (2 * 4 * H) + S * BATCH * (2 * 8 * H)
_BYTES = 4 * (S * BATCH * D + A_ROWS * 4 * H + B_ROWS * 8 * H
              + S * 2 * H * C_PAD + BATCH * C_PAD)


def _gate_activations(gates, gmask):
    """One transcendental per step: tanh on g-gate lanes, sigmoid elsewhere
    via sigmoid(x) = 0.5*tanh(0.5*x) + 0.5 (EUP once, cheap VPU fix-ups)."""
    arg = jnp.where(gmask, gates, 0.5 * gates)
    t = jnp.tanh(arg)
    return jnp.where(gmask, t, 0.5 * t + 0.5)


# ---------------------------------------------------------------------------
# Kernel
# ---------------------------------------------------------------------------
def doppler_bilstm_kernel(x_ref, pa_ref, pb_ref, wfc_hbm_ref, out_ref,
                          x2_ref, h2hist_ref, wfc_vmem_ref, wfc_sem):
    # x_ref   : (S*B, D)      time-major input (BN done in-kernel)
    # pa_ref  : (A_ROWS, 128) packed LSTM1 params + classifier bias (VMEM)
    # pb_ref  : (B_ROWS, 256) packed fused bidirectional LSTM2 params (VMEM)
    # wfc_hbm : (S*2H, 128)   permuted classifier weights, left in HBM (pl.ANY)
    # out_ref : (B, C_PAD)    lane-dense padded logits
    # x2_ref  : VMEM scratch (S*B, 2H): row block t = [seq1[t] | seq1[S-1-t]]
    # h2hist  : VMEM scratch (B, S*2H): fused LSTM2 states laid out for the fc
    # wfc_vmem: VMEM scratch (S*2H, 128) classifier weight landing buffer
    # wfc_sem : DMA semaphore

    # Kick off the classifier-weight fetch immediately; it is only consumed
    # after BOTH recurrences, so the serial LSTM chain hides the whole DMA.
    wfc_cp = pltpu.make_async_copy(wfc_hbm_ref, wfc_vmem_ref, wfc_sem)
    wfc_cp.start()

    xv = x_ref[...]

    # ---- BatchNorm1d: training-mode batch stats over (B, S), gamma=1, beta=0
    mean = jnp.mean(xv, axis=0, keepdims=True)
    var = jnp.mean((xv - mean) ** 2, axis=0, keepdims=True)
    xn = (xv - mean) * jax.lax.rsqrt(var + EPS)                    # (S*B, D)

    # ---- unpack parameters (static, 8-aligned row slices) ----
    wih1 = pa_ref[ROW_WIH1:ROW_WIH1 + D, :]                        # (D, 4H)
    whh1 = pa_ref[ROW_WHH1:ROW_WHH1 + H, :]                        # (H, 4H)
    b1 = pa_ref[ROW_B1:ROW_B1 + 1, :]                              # (1, 4H)
    bfc = pa_ref[ROW_BFC:ROW_BFC + 1, :]                           # (1, 128)
    wih2 = pb_ref[ROW_WIH2:ROW_WIH2 + 2 * H, :]                    # (2H, 8H)
    whh2 = pb_ref[ROW_WHH2:ROW_WHH2 + 2 * H, :]                    # (2H, 8H)
    b2 = pb_ref[ROW_B2:ROW_B2 + 1, :]                              # (1, 8H)

    # ---- hoisted LSTM1 input projection (+ folded bias): ONE matmul ----
    xp1 = jnp.dot(xn, wih1, preferred_element_type=jnp.float32) + b1   # (S*B,4H)

    # lane masks selecting the tanh ("g") gate blocks (hoisted out of loops)
    lane1 = jax.lax.broadcasted_iota(jnp.int32, (BATCH, 4 * H), 1)
    gmask1 = (lane1 >= 2 * H) & (lane1 < 3 * H)
    lane2 = jax.lax.broadcasted_iota(jnp.int32, (BATCH, 8 * H), 1)
    gmask2 = (lane2 >= 4 * H) & (lane2 < 6 * H)

    # ---- LSTM1 (unidirectional); gate layout [i f g o] along lanes ----
    # Invariant: c1 lanes [H,4H) accumulate never-read values; every
    # multiplier there is a tanh/sigmoid output (|.|<1) so they stay bounded.
    h1 = jnp.zeros((BATCH, H), jnp.float32)
    c1 = jnp.zeros((BATCH, 4 * H), jnp.float32)        # valid lanes [0, H)
    for t in range(S):                                  # static unroll (S small)
        gates = xp1[t * BATCH:(t + 1) * BATCH, :] + jnp.dot(
            h1, whh1, preferred_element_type=jnp.float32)          # (B, 4H)
        act = _gate_activations(gates, gmask1)
        f_al = pltpu.roll(act, 3 * H, axis=1)           # f -> lanes [0, H)
        g_al = pltpu.roll(act, 2 * H, axis=1)           # g -> lanes [0, H)
        o_al = pltpu.roll(act, 1 * H, axis=1)           # o -> lanes [0, H)
        c1 = f_al * c1 + act * g_al                     # valid at lanes [0, H)
        h1 = (o_al * jnp.tanh(c1))[:, :H]               # offset-0 slice (free)
        # stage fused-LSTM2 input: forward copy at [:, :H], reversed at [:, H:]
        x2_ref[t * BATCH:(t + 1) * BATCH, 0:H] = h1
        x2_ref[(S - 1 - t) * BATCH:(S - t) * BATCH, H:2 * H] = h1

    # ---- hoisted fused LSTM2 input projection: ONE matmul for both dirs ----
    xp2 = jnp.dot(x2_ref[...], wih2,
                  preferred_element_type=jnp.float32) + b2         # (S*B, 8H)

    # ---- fused bidirectional LSTM2 ----
    # fused gate layout: [i_f, i_b, f_f, f_b, g_f, g_b, o_f, o_b] (8 H-blocks)
    h2 = jnp.zeros((BATCH, 2 * H), jnp.float32)         # [h_fwd | h_bwd]
    c2 = jnp.zeros((BATCH, 8 * H), jnp.float32)         # valid lanes [0, 2H)
    for s in range(S):
        gates = xp2[s * BATCH:(s + 1) * BATCH, :] + jnp.dot(
            h2, whh2, preferred_element_type=jnp.float32)          # (B, 8H)
        act = _gate_activations(gates, gmask2)
        f_al = pltpu.roll(act, 6 * H, axis=1)           # [f_f|f_b] -> [0, 2H)
        g_al = pltpu.roll(act, 4 * H, axis=1)
        o_al = pltpu.roll(act, 2 * H, axis=1)
        c2 = f_al * c2 + act * g_al                     # valid at lanes [0, 2H)
        h2 = (o_al * jnp.tanh(c2))[:, :2 * H]           # [h_fwd(s) | h_bwd(S-1-s)]
        # stage for the single post-loop classifier matmul (off the chain)
        h2hist_ref[:, s * 2 * H:(s + 1) * 2 * H] = h2

    # ---- classifier: ONE (B, S*2H) @ (S*2H, 128) matmul after the loop ----
    wfc_cp.wait()                                       # DMA long since done
    logits = jnp.dot(h2hist_ref[...], wfc_vmem_ref[...],
                     preferred_element_type=jnp.float32)            # (B, 128)
    out_ref[...] = logits + bfc


# ---------------------------------------------------------------------------
# Wrapper: layout plumbing + pallas_call (no grid; everything fits VMEM)
# ---------------------------------------------------------------------------
def _forward(x2d, pa, pb, wfc_packed):
    out_pad = pl.pallas_call(
        doppler_bilstm_kernel,
        out_shape=jax.ShapeDtypeStruct((BATCH, C_PAD), jnp.float32),
        in_specs=[
            pl.BlockSpec(memory_space=pltpu.MemorySpace.VMEM),   # x
            pl.BlockSpec(memory_space=pltpu.MemorySpace.VMEM),   # pa
            pl.BlockSpec(memory_space=pltpu.MemorySpace.VMEM),   # pb
            pl.BlockSpec(memory_space=pl.ANY),                   # wfc (HBM, manual DMA)
        ],
        out_specs=pl.BlockSpec(memory_space=pltpu.MemorySpace.VMEM),
        scratch_shapes=[
            pltpu.VMEM((S * BATCH, 2 * H), jnp.float32),         # x2 staging
            pltpu.VMEM((BATCH, S * 2 * H), jnp.float32),         # h2 history
            pltpu.VMEM((S * 2 * H, C_PAD), jnp.float32),         # wfc landing
            pltpu.SemaphoreType.DMA(()),
        ],
        cost_estimate=pl.CostEstimate(flops=_FLOPS, transcendentals=_TRANSC,
                                      bytes_accessed=_BYTES),
    )(x2d, pa, pb, wfc_packed)
    return out_pad[:, :NUM_CLASSES]


@jax.jit
def doppler_bilstm(x, pa, pb, wfc_packed):
    # (B, IMG_H, IMG_W) -> (B, D, S) -> time-major (S*B, D): layout plumbing only.
    x_bds = x.reshape(BATCH, D, S)
    x2d = jnp.transpose(x_bds, (2, 0, 1)).reshape(S * BATCH, D)
    return _forward(x2d, pa, pb, wfc_packed)


# ---------------------------------------------------------------------------
# Host-side parameter packing (done once)
# ---------------------------------------------------------------------------
def pack_params(params):
    (wih1, whh1, b1, wih2f, whh2f, b2f, wih2b, whh2b, b2b, wfc, bfc) = params

    def fuse_bidir(wf, wb):
        # (K,4H),(K,4H) -> block-diag (2K,8H), gate blocks interleaved
        # as [i_f, i_b, f_f, f_b, g_f, g_b, o_f, o_b].
        k_rows = wf.shape[0]
        z = jnp.zeros((k_rows, H), jnp.float32)
        cols = []
        for k in range(4):
            cols.append(jnp.concatenate([wf[:, k * H:(k + 1) * H], z], axis=0))
            cols.append(jnp.concatenate([z, wb[:, k * H:(k + 1) * H]], axis=0))
        return jnp.concatenate(cols, axis=1)

    wih2 = fuse_bidir(wih2f, wih2b)                               # (2H, 8H)
    whh2 = fuse_bidir(whh2f, whh2b)                               # (2H, 8H)
    b2 = jnp.concatenate(
        [jnp.concatenate([b2f[:, k * H:(k + 1) * H],
                          b2b[:, k * H:(k + 1) * H]], axis=1)
         for k in range(4)], axis=1)                              # (1, 8H)

    # classifier rows permuted into per-fused-step blocks: at fused step s the
    # state is [h_fwd(s) | h_bwd(S-1-s)]; flat order in PyTorch is
    # [hf_0|hb_0|hf_1|hb_1|...] so pick rows accordingly, pad cols 6 -> 128.
    blocks = []
    for s in range(S):
        tb = S - 1 - s
        blk = jnp.concatenate([wfc[2 * H * s:2 * H * s + H, :],
                               wfc[2 * H * tb + H:2 * H * tb + 2 * H, :]],
                              axis=0)                             # (2H, C)
        blocks.append(jnp.pad(blk, ((0, 0), (0, C_PAD - NUM_CLASSES))))
    wfc_packed = jnp.concatenate(blocks, axis=0)                  # (S*2H, 128)
    bfc_pad = jnp.pad(bfc, ((0, 0), (0, C_PAD - NUM_CLASSES)))    # (1, 128)

    pa = jnp.zeros((A_ROWS, 4 * H), jnp.float32)
    pa = pa.at[ROW_WIH1:ROW_WIH1 + D, :].set(wih1)
    pa = pa.at[ROW_WHH1:ROW_WHH1 + H, :].set(whh1)
    pa = pa.at[ROW_B1:ROW_B1 + 1, :].set(b1)
    pa = pa.at[ROW_BFC:ROW_BFC + 1, :].set(bfc_pad)

    pb = jnp.zeros((B_ROWS, 8 * H), jnp.float32)
    pb = pb.at[ROW_WIH2:ROW_WIH2 + 2 * H, :].set(wih2)
    pb = pb.at[ROW_WHH2:ROW_WHH2 + 2 * H, :].set(whh2)
    pb = pb.at[ROW_B2:ROW_B2 + 1, :].set(b2)
    return pa, pb, wfc_packed


# ---------------------------------------------------------------------------
# Pure-JAX reference (mirrors the PyTorch forward), for validation
# ---------------------------------------------------------------------------
def reference(x, params):
    (wih1, whh1, b1, wih2f, whh2f, b2f, wih2b, whh2b, b2b, wfc, bfc) = params
    mean = jnp.mean(x, axis=(0, 2), keepdims=True)
    var = jnp.mean((x - mean) ** 2, axis=(0, 2), keepdims=True)
    xn = (x - mean) * jax.lax.rsqrt(var + EPS)
    B = x.shape[0]

    def run(seq_fn, w_ih, w_hh, b, order):
        h = jnp.zeros((B, H), jnp.float32)
        c = jnp.zeros((B, H), jnp.float32)
        outs = [None] * S
        for t in order:
            g = seq_fn(t) @ w_ih + h @ w_hh + b
            i = jax.nn.sigmoid(g[:, :H]); f = jax.nn.sigmoid(g[:, H:2 * H])
            gg = jnp.tanh(g[:, 2 * H:3 * H]); o = jax.nn.sigmoid(g[:, 3 * H:])
            c = f * c + i * gg
            h = o * jnp.tanh(c)
            outs[t] = h
        return outs

    s1 = run(lambda t: xn[:, :, t], wih1, whh1, b1, range(S))
    s2f = run(lambda t: s1[t], wih2f, whh2f, b2f, range(S))
    s2b = run(lambda t: s1[t], wih2b, whh2b, b2b, reversed(range(S)))
    flat = jnp.concatenate(
        [jnp.concatenate([s2f[t], s2b[t]], axis=-1) for t in range(S)], axis=-1)
    return flat @ wfc + bfc


def make_params(key):
    k = 1.0 / jnp.sqrt(jnp.float32(H))
    keys = jax.random.split(key, 16)
    u = lambda kk, shape: jax.random.uniform(kk, shape, jnp.float32, -k, k)

    wih1 = u(keys[0], (D, 4 * H))
    whh1 = u(keys[1], (H, 4 * H))
    b1 = (u(keys[2], (1, 4 * H)) + u(keys[3], (1, 4 * H)))       # b_ih + b_hh

    wih2f = u(keys[4], (H, 4 * H))
    whh2f = u(keys[5], (H, 4 * H))
    b2f = (u(keys[6], (1, 4 * H)) + u(keys[7], (1, 4 * H)))

    wih2b = u(keys[8], (H, 4 * H))
    whh2b = u(keys[9], (H, 4 * H))
    b2b = (u(keys[10], (1, 4 * H)) + u(keys[11], (1, 4 * H)))

    # classifier: Linear(2*S*H -> num_classes), normal(0, 0.01) weight, 0 bias
    wfc = 0.01 * jax.random.normal(keys[12], (2 * S * H, NUM_CLASSES),
                                   jnp.float32)
    bfc = jnp.zeros((1, NUM_CLASSES), jnp.float32)

    return (wih1, whh1, b1, wih2f, whh2f, b2f, wih2b, whh2b, b2b, wfc, bfc)


if __name__ == "__main__":
    key = jax.random.PRNGKey(0)
    kx, kp = jax.random.split(key)

    # channels == 1 path: PyTorch input is (B, IMG_H, IMG_W)
    x = jax.random.normal(kx, (BATCH, IMG_H, IMG_W), jnp.float32)
    params = make_params(kp)
    pa, pb, wfc_packed = pack_params(params)   # host-side packing, done once

    out = doppler_bilstm(x, pa, pb, wfc_packed)
    out = jax.block_until_ready(out)

    ref = jax.block_until_ready(reference(x.reshape(BATCH, D, S), params))
    assert out.shape == (BATCH, NUM_CLASSES)
    assert jnp.allclose(out, ref, atol=1e-3, rtol=1e-3), (out, ref)

    print("KERNEL_OK")
</pallas_src>

<mosaic_0001>
module attributes {stable_mosaic.version = 11 : i64} {
  func.func @doppler_bilstm_kernel(%arg0: memref<16x16xf32, #tpu.memory_space<vmem>>, %arg1: memref<64x128xf32, #tpu.memory_space<vmem>>, %arg2: memref<136x256xf32, #tpu.memory_space<vmem>>, %arg3: memref<512x128xf32, #tpu.memory_space<any>>, %arg4: memref<2x128xf32, #tpu.memory_space<vmem>>, %arg5: memref<16x64xf32, #tpu.memory_space<vmem>>, %arg6: memref<2x512xf32, #tpu.memory_space<vmem>>, %arg7: memref<512x128xf32, #tpu.memory_space<vmem>>, %arg8: memref<!tpu.dma_semaphore, #tpu.memory_space<semaphore_mem>>) attributes {dimension_semantics = [], scalar_prefetch = 0 : i64, scratch_operands = 4 : i64, tpu.core_type = #tpu.core_type<tc>} {
    tpu.enqueue_dma source(%arg3 : memref<512x128xf32, #tpu.memory_space<any>>) target(%arg7 : memref<512x128xf32, #tpu.memory_space<vmem>>) target_semaphore(%arg8 : memref<!tpu.dma_semaphore, #tpu.memory_space<semaphore_mem>>)
    %c0 = arith.constant 0 : index
    %c0_0 = arith.constant 0 : index
    %0 = vector.load %arg0[%c0, %c0_0] : memref<16x16xf32, #tpu.memory_space<vmem>>, vector<16x16xf32>
    %cst = arith.constant dense<0.000000e+00> : vector<16xf32>
    %1 = vector.multi_reduction <add>, %0, %cst [0] : vector<16x16xf32> to vector<16xf32>
    %2 = vector.shape_cast %1 : vector<16xf32> to vector<1x16xf32>
    %cst_1 = arith.constant 1.600000e+01 : f32
    %3 = vector.broadcast %cst_1 : f32 to vector<1x16xf32>
    %4 = arith.divf %2, %3 : vector<1x16xf32>
    %5 = vector.broadcast %4 : vector<1x16xf32> to vector<16x16xf32>
    %6 = arith.subf %0, %5 : vector<16x16xf32>
    %7 = arith.mulf %6, %6 : vector<16x16xf32>
    %cst_2 = arith.constant dense<0.000000e+00> : vector<16xf32>
    %8 = vector.multi_reduction <add>, %7, %cst_2 [0] : vector<16x16xf32> to vector<16xf32>
    %9 = vector.shape_cast %8 : vector<16xf32> to vector<1x16xf32>
    %cst_3 = arith.constant 1.600000e+01 : f32
    %10 = vector.broadcast %cst_3 : f32 to vector<1x16xf32>
    %11 = arith.divf %9, %10 : vector<1x16xf32>
    %12 = vector.broadcast %4 : vector<1x16xf32> to vector<16x16xf32>
    %13 = arith.subf %0, %12 : vector<16x16xf32>
    %cst_4 = arith.constant 9.99999974E-6 : f32
    %14 = vector.broadcast %cst_4 : f32 to vector<1x16xf32>
    %15 = arith.addf %11, %14 : vector<1x16xf32>
    %16 = math.rsqrt %15 : vector<1x16xf32>
    %17 = vector.broadcast %16 : vector<1x16xf32> to vector<16x16xf32>
    %18 = arith.mulf %13, %17 : vector<16x16xf32>
    %c0_5 = arith.constant 0 : index
    %c0_6 = arith.constant 0 : index
    %19 = vector.load %arg1[%c0_5, %c0_6] : memref<64x128xf32, #tpu.memory_space<vmem>>, vector<16x128xf32>
    %c16 = arith.constant 16 : index
    %c0_7 = arith.constant 0 : index
    %20 = vector.load %arg1[%c16, %c0_7] : memref<64x128xf32, #tpu.memory_space<vmem>>, vector<32x128xf32>
    %c48 = arith.constant 48 : index
    %c0_8 = arith.constant 0 : index
    %21 = vector.load %arg1[%c48, %c0_8] : memref<64x128xf32, #tpu.memory_space<vmem>>, vector<1x128xf32>
    %c56 = arith.constant 56 : index
    %c0_9 = arith.constant 0 : index
    %22 = vector.load %arg1[%c56, %c0_9] : memref<64x128xf32, #tpu.memory_space<vmem>>, vector<1x128xf32>
    %c0_10 = arith.constant 0 : index
    %c0_11 = arith.constant 0 : index
    %23 = vector.load %arg2[%c0_10, %c0_11] : memref<136x256xf32, #tpu.memory_space<vmem>>, vector<64x256xf32>
    %c64 = arith.constant 64 : index
    %c0_12 = arith.constant 0 : index
    %24 = vector.load %arg2[%c64, %c0_12] : memref<136x256xf32, #tpu.memory_space<vmem>>, vector<64x256xf32>
    %c128 = arith.constant 128 : index
    %c0_13 = arith.constant 0 : index
    %25 = vector.load %arg2[%c128, %c0_13] : memref<136x256xf32, #tpu.memory_space<vmem>>, vector<1x256xf32>
    %cst_14 = arith.constant dense<0.000000e+00> : vector<16x128xf32>
    %26 = tpu.matmul %18, %19, %cst_14 {dimension_numbers = #tpu.dot_dimension_numbers<[1], [0], [0], [1], [0, 0, 1, 1], [], []>} : vector<16x16xf32>, vector<16x128xf32>, vector<16x128xf32> -> vector<16x128xf32>
    %27 = vector.broadcast %21 : vector<1x128xf32> to vector<16x128xf32>
    %28 = arith.addf %26, %27 : vector<16x128xf32>
    %29 = tpu.iota {dimensions = array<i32: 1>} : vector<2x128xi32>
    %c64_i32 = arith.constant 64 : i32
    %30 = vector.broadcast %c64_i32 : i32 to vector<2x128xi32>
    %31 = arith.cmpi sge, %29, %30 : vector<2x128xi32>
    %c96_i32 = arith.constant 96 : i32
    %32 = vector.broadcast %c96_i32 : i32 to vector<2x128xi32>
    %33 = arith.cmpi slt, %29, %32 : vector<2x128xi32>
    %34 = arith.andi %31, %33 : vector<2x128xi1>
    %35 = tpu.iota {dimensions = array<i32: 1>} : vector<2x256xi32>
    %c128_i32 = arith.constant 128 : i32
    %36 = vector.broadcast %c128_i32 : i32 to vector<2x256xi32>
    %37 = arith.cmpi sge, %35, %36 : vector<2x256xi32>
    %c192_i32 = arith.constant 192 : i32
    %38 = vector.broadcast %c192_i32 : i32 to vector<2x256xi32>
    %39 = arith.cmpi slt, %35, %38 : vector<2x256xi32>
    %40 = arith.andi %37, %39 : vector<2x256xi1>
    %cst_15 = arith.constant 0.000000e+00 : f32
    %41 = vector.broadcast %cst_15 : f32 to vector<2x32xf32>
    %cst_16 = arith.constant 0.000000e+00 : f32
    %42 = vector.broadcast %cst_16 : f32 to vector<2x128xf32>
    %43 = vector.extract_strided_slice %28 {offsets = [0, 0], sizes = [2, 128], strides = [1, 1]} : vector<16x128xf32> to vector<2x128xf32>
    %cst_17 = arith.constant dense<0.000000e+00> : vector<2x128xf32>
    %44 = tpu.matmul %41, %20, %cst_17 {dimension_numbers = #tpu.dot_dimension_numbers<[1], [0], [0], [1], [0, 0, 1, 1], [], []>} : vector<2x32xf32>, vector<32x128xf32>, vector<2x128xf32> -> vector<2x128xf32>
    %45 = arith.addf %43, %44 : vector<2x128xf32>
    %cst_18 = arith.constant 5.000000e-01 : f32
    %46 = vector.broadcast %cst_18 : f32 to vector<2x128xf32>
    %47 = arith.mulf %46, %45 : vector<2x128xf32>
    %48 = arith.select %34, %45, %47 : vector<2x128xi1>, vector<2x128xf32>
    %49 = math.tanh %48 : vector<2x128xf32>
    %cst_19 = arith.constant 5.000000e-01 : f32
    %50 = vector.broadcast %cst_19 : f32 to vector<2x128xf32>
    %51 = arith.mulf %50, %49 : vector<2x128xf32>
    %cst_20 = arith.constant 5.000000e-01 : f32
    %52 = vector.broadcast %cst_20 : f32 to vector<2x128xf32>
    %53 = arith.addf %51, %52 : vector<2x128xf32>
    %54 = arith.select %34, %49, %53 : vector<2x128xi1>, vector<2x128xf32>
    %c96_i32_21 = arith.constant 96 : i32
    %55 = tpu.dynamic_rotate %54 by %c96_i32_21 dim 1 : vector<2x128xf32>, i32 -> vector<2x128xf32>
    %c64_i32_22 = arith.constant 64 : i32
    %56 = tpu.dynamic_rotate %54 by %c64_i32_22 dim 1 : vector<2x128xf32>, i32 -> vector<2x128xf32>
    %c32_i32 = arith.constant 32 : i32
    %57 = tpu.dynamic_rotate %54 by %c32_i32 dim 1 : vector<2x128xf32>, i32 -> vector<2x128xf32>
    %58 = arith.mulf %55, %42 : vector<2x128xf32>
    %59 = arith.mulf %54, %56 : vector<2x128xf32>
    %60 = arith.addf %58, %59 : vector<2x128xf32>
    %61 = math.tanh %60 : vector<2x128xf32>
    %62 = arith.mulf %57, %61 : vector<2x128xf32>
    %63 = vector.extract_strided_slice %62 {offsets = [0, 0], sizes = [2, 32], strides = [1, 1]} : vector<2x128xf32> to vector<2x32xf32>
    %c0_23 = arith.constant 0 : index
    %c0_24 = arith.constant 0 : index
    %64 = vector.load %arg5[%c0_23, %c0_24] : memref<16x64xf32, #tpu.memory_space<vmem>>, vector<2x32xf32>
    tpu.vector_store %arg5[%c0_23, %c0_24], %63 {strides = array<i32>} : memref<16x64xf32, #tpu.memory_space<vmem>>, vector<2x32xf32>,
    %c14 = arith.constant 14 : index
    %c32 = arith.constant 32 : index
    %65 = vector.load %arg5[%c14, %c32] : memref<16x64xf32, #tpu.memory_space<vmem>>, vector<2x32xf32>
    tpu.vector_store %arg5[%c14, %c32], %63 {strides = array<i32>} : memref<16x64xf32, #tpu.memory_space<vmem>>, vector<2x32xf32>,
    %66 = vector.extract_strided_slice %28 {offsets = [2, 0], sizes = [2, 128], strides = [1, 1]} : vector<16x128xf32> to vector<2x128xf32>
    %cst_25 = arith.constant dense<0.000000e+00> : vector<2x128xf32>
    %67 = tpu.matmul %63, %20, %cst_25 {dimension_numbers = #tpu.dot_dimension_numbers<[1], [0], [0], [1], [0, 0, 1, 1], [], []>} : vector<2x32xf32>, vector<32x128xf32>, vector<2x128xf32> -> vector<2x128xf32>
    %68 = arith.addf %66, %67 : vector<2x128xf32>
    %cst_26 = arith.constant 5.000000e-01 : f32
    %69 = vector.broadcast %cst_26 : f32 to vector<2x128xf32>
    %70 = arith.mulf %69, %68 : vector<2x128xf32>
    %71 = arith.select %34, %68, %70 : vector<2x128xi1>, vector<2x128xf32>
    %72 = math.tanh %71 : vector<2x128xf32>
    %cst_27 = arith.constant 5.000000e-01 : f32
    %73 = vector.broadcast %cst_27 : f32 to vector<2x128xf32>
    %74 = arith.mulf %73, %72 : vector<2x128xf32>
    %cst_28 = arith.constant 5.000000e-01 : f32
    %75 = vector.broadcast %cst_28 : f32 to vector<2x128xf32>
    %76 = arith.addf %74, %75 : vector<2x128xf32>
    %77 = arith.select %34, %72, %76 : vector<2x128xi1>, vector<2x128xf32>
    %c96_i32_29 = arith.constant 96 : i32
    %78 = tpu.dynamic_rotate %77 by %c96_i32_29 dim 1 : vector<2x128xf32>, i32 -> vector<2x128xf32>
    %c64_i32_30 = arith.constant 64 : i32
    %79 = tpu.dynamic_rotate %77 by %c64_i32_30 dim 1 : vector<2x128xf32>, i32 -> vector<2x128xf32>
    %c32_i32_31 = arith.constant 32 : i32
    %80 = tpu.dynamic_rotate %77 by %c32_i32_31 dim 1 : vector<2x128xf32>, i32 -> vector<2x128xf32>
    %81 = arith.mulf %78, %60 : vector<2x128xf32>
    %82 = arith.mulf %77, %79 : vector<2x128xf32>
    %83 = arith.addf %81, %82 : vector<2x128xf32>
    %84 = math.tanh %83 : vector<2x128xf32>
    %85 = arith.mulf %80, %84 : vector<2x128xf32>
    %86 = vector.extract_strided_slice %85 {offsets = [0, 0], sizes = [2, 32], strides = [1, 1]} : vector<2x128xf32> to vector<2x32xf32>
    %c2 = arith.constant 2 : index
    %c0_32 = arith.constant 0 : index
    %87 = vector.load %arg5[%c2, %c0_32] : memref<16x64xf32, #tpu.memory_space<vmem>>, vector<2x32xf32>
    tpu.vector_store %arg5[%c2, %c0_32], %86 {strides = array<i32>} : memref<16x64xf32, #tpu.memory_space<vmem>>, vector<2x32xf32>,
    %c12 = arith.constant 12 : index
    %c32_33 = arith.constant 32 : index
    %88 = vector.load %arg5[%c12, %c32_33] : memref<16x64xf32, #tpu.memory_space<vmem>>, vector<2x32xf32>
    tpu.vector_store %arg5[%c12, %c32_33], %86 {strides = array<i32>} : memref<16x64xf32, #tpu.memory_space<vmem>>, vector<2x32xf32>,
    %89 = vector.extract_strided_slice %28 {offsets = [4, 0], sizes = [2, 128], strides = [1, 1]} : vector<16x128xf32> to vector<2x128xf32>
    %cst_34 = arith.constant dense<0.000000e+00> : vector<2x128xf32>
    %90 = tpu.matmul %86, %20, %cst_34 {dimension_numbers = #tpu.dot_dimension_numbers<[1], [0], [0], [1], [0, 0, 1, 1], [], []>} : vector<2x32xf32>, vector<32x128xf32>, vector<2x128xf32> -> vector<2x128xf32>
    %91 = arith.addf %89, %90 : vector<2x128xf32>
    %cst_35 = arith.constant 5.000000e-01 : f32
    %92 = vector.broadcast %cst_35 : f32 to vector<2x128xf32>
    %93 = arith.mulf %92, %91 : vector<2x128xf32>
    %94 = arith.select %34, %91, %93 : vector<2x128xi1>, vector<2x128xf32>
    %95 = math.tanh %94 : vector<2x128xf32>
    %cst_36 = arith.constant 5.000000e-01 : f32
    %96 = vector.broadcast %cst_36 : f32 to vector<2x128xf32>
    %97 = arith.mulf %96, %95 : vector<2x128xf32>
    %cst_37 = arith.constant 5.000000e-01 : f32
    %98 = vector.broadcast %cst_37 : f32 to vector<2x128xf32>
    %99 = arith.addf %97, %98 : vector<2x128xf32>
    %100 = arith.select %34, %95, %99 : vector<2x128xi1>, vector<2x128xf32>
    %c96_i32_38 = arith.constant 96 : i32
    %101 = tpu.dynamic_rotate %100 by %c96_i32_38 dim 1 : vector<2x128xf32>, i32 -> vector<2x128xf32>
    %c64_i32_39 = arith.constant 64 : i32
    %102 = tpu.dynamic_rotate %100 by %c64_i32_39 dim 1 : vector<2x128xf32>, i32 -> vector<2x128xf32>
    %c32_i32_40 = arith.constant 32 : i32
    %103 = tpu.dynamic_rotate %100 by %c32_i32_40 dim 1 : vector<2x128xf32>, i32 -> vector<2x128xf32>
    %104 = arith.mulf %101, %83 : vector<2x128xf32>
    %105 = arith.mulf %100, %102 : vector<2x128xf32>
    %106 = arith.addf %104, %105 : vector<2x128xf32>
    %107 = math.tanh %106 : vector<2x128xf32>
    %108 = arith.mulf %103, %107 : vector<2x128xf32>
    %109 = vector.extract_strided_slice %108 {offsets = [0, 0], sizes = [2, 32], strides = [1, 1]} : vector<2x128xf32> to vector<2x32xf32>
    %c4 = arith.constant 4 : index
    %c0_41 = arith.constant 0 : index
    %110 = vector.load %arg5[%c4, %c0_41] : memref<16x64xf32, #tpu.memory_space<vmem>>, vector<2x32xf32>
    tpu.vector_store %arg5[%c4, %c0_41], %109 {strides = array<i32>} : memref<16x64xf32, #tpu.memory_space<vmem>>, vector<2x32xf32>,
    %c10 = arith.constant 10 : index
    %c32_42 = arith.constant 32 : index
    %111 = vector.load %arg5[%c10, %c32_42] : memref<16x64xf32, #tpu.memory_space<vmem>>, vector<2x32xf32>
    tpu.vector_store %arg5[%c10, %c32_42], %109 {strides = array<i32>} : memref<16x64xf32, #tpu.memory_space<vmem>>, vector<2x32xf32>,
    %112 = vector.extract_strided_slice %28 {offsets = [6, 0], sizes = [2, 128], strides = [1, 1]} : vector<16x128xf32> to vector<2x128xf32>
    %cst_43 = arith.constant dense<0.000000e+00> : vector<2x128xf32>
    %113 = tpu.matmul %109, %20, %cst_43 {dimension_numbers = #tpu.dot_dimension_numbers<[1], [0], [0], [1], [0, 0, 1, 1], [], []>} : vector<2x32xf32>, vector<32x128xf32>, vector<2x128xf32> -> vector<2x128xf32>
    %114 = arith.addf %112, %113 : vector<2x128xf32>
    %cst_44 = arith.constant 5.000000e-01 : f32
    %115 = vector.broadcast %cst_44 : f32 to vector<2x128xf32>
    %116 = arith.mulf %115, %114 : vector<2x128xf32>
    %117 = arith.select %34, %114, %116 : vector<2x128xi1>, vector<2x128xf32>
    %118 = math.tanh %117 : vector<2x128xf32>
    %cst_45 = arith.constant 5.000000e-01 : f32
    %119 = vector.broadcast %cst_45 : f32 to vector<2x128xf32>
    %120 = arith.mulf %119, %118 : vector<2x128xf32>
    %cst_46 = arith.constant 5.000000e-01 : f32
    %121 = vector.broadcast %cst_46 : f32 to vector<2x128xf32>
    %122 = arith.addf %120, %121 : vector<2x128xf32>
    %123 = arith.select %34, %118, %122 : vector<2x128xi1>, vector<2x128xf32>
    %c96_i32_47 = arith.constant 96 : i32
    %124 = tpu.dynamic_rotate %123 by %c96_i32_47 dim 1 : vector<2x128xf32>, i32 -> vector<2x128xf32>
    %c64_i32_48 = arith.constant 64 : i32
    %125 = tpu.dynamic_rotate %123 by %c64_i32_48 dim 1 : vector<2x128xf32>, i32 -> vector<2x128xf32>
    %c32_i32_49 = arith.constant 32 : i32
    %126 = tpu.dynamic_rotate %123 by %c32_i32_49 dim 1 : vector<2x128xf32>, i32 -> vector<2x128xf32>
    %127 = arith.mulf %124, %106 : vector<2x128xf32>
    %128 = arith.mulf %123, %125 : vector<2x128xf32>
    %129 = arith.addf %127, %128 : vector<2x128xf32>
    %130 = math.tanh %129 : vector<2x128xf32>
    %131 = arith.mulf %126, %130 : vector<2x128xf32>
    %132 = vector.extract_strided_slice %131 {offsets = [0, 0], sizes = [2, 32], strides = [1, 1]} : vector<2x128xf32> to vector<2x32xf32>
    %c6 = arith.constant 6 : index
    %c0_50 = arith.constant 0 : index
    %133 = vector.load %arg5[%c6, %c0_50] : memref<16x64xf32, #tpu.memory_space<vmem>>, vector<2x32xf32>
    tpu.vector_store %arg5[%c6, %c0_50], %132 {strides = array<i32>} : memref<16x64xf32, #tpu.memory_space<vmem>>, vector<2x32xf32>,
    %c8 = arith.constant 8 : index
    %c32_51 = arith.constant 32 : index
    %134 = vector.load %arg5[%c8, %c32_51] : memref<16x64xf32, #tpu.memory_space<vmem>>, vector<2x32xf32>
    tpu.vector_store %arg5[%c8, %c32_51], %132 {strides = array<i32>} : memref<16x64xf32, #tpu.memory_space<vmem>>, vector<2x32xf32>,
    %135 = vector.extract_strided_slice %28 {offsets = [8, 0], sizes = [2, 128], strides = [1, 1]} : vector<16x128xf32> to vector<2x128xf32>
    %cst_52 = arith.constant dense<0.000000e+00> : vector<2x128xf32>
    %136 = tpu.matmul %132, %20, %cst_52 {dimension_numbers = #tpu.dot_dimension_numbers<[1], [0], [0], [1], [0, 0, 1, 1], [], []>} : vector<2x32xf32>, vector<32x128xf32>, vector<2x128xf32> -> vector<2x128xf32>
    %137 = arith.addf %135, %136 : vector<2x128xf32>
    %cst_53 = arith.constant 5.000000e-01 : f32
    %138 = vector.broadcast %cst_53 : f32 to vector<2x128xf32>
    %139 = arith.mulf %138, %137 : vector<2x128xf32>
    %140 = arith.select %34, %137, %139 : vector<2x128xi1>, vector<2x128xf32>
    %141 = math.tanh %140 : vector<2x128xf32>
    %cst_54 = arith.constant 5.000000e-01 : f32
    %142 = vector.broadcast %cst_54 : f32 to vector<2x128xf32>
    %143 = arith.mulf %142, %141 : vector<2x128xf32>
    %cst_55 = arith.constant 5.000000e-01 : f32
    %144 = vector.broadcast %cst_55 : f32 to vector<2x128xf32>
    %145 = arith.addf %143, %144 : vector<2x128xf32>
    %146 = arith.select %34, %141, %145 : vector<2x128xi1>, vector<2x128xf32>
    %c96_i32_56 = arith.constant 96 : i32
    %147 = tpu.dynamic_rotate %146 by %c96_i32_56 dim 1 : vector<2x128xf32>, i32 -> vector<2x128xf32>
    %c64_i32_57 = arith.constant 64 : i32
    %148 = tpu.dynamic_rotate %146 by %c64_i32_57 dim 1 : vector<2x128xf32>, i32 -> vector<2x128xf32>
    %c32_i32_58 = arith.constant 32 : i32
    %149 = tpu.dynamic_rotate %146 by %c32_i32_58 dim 1 : vector<2x128xf32>, i32 -> vector<2x128xf32>
    %150 = arith.mulf %147, %129 : vector<2x128xf32>
    %151 = arith.mulf %146, %148 : vector<2x128xf32>
    %152 = arith.addf %150, %151 : vector<2x128xf32>
    %153 = math.tanh %152 : vector<2x128xf32>
    %154 = arith.mulf %149, %153 : vector<2x128xf32>
    %155 = vector.extract_strided_slice %154 {offsets = [0, 0], sizes = [2, 32], strides = [1, 1]} : vector<2x128xf32> to vector<2x32xf32>
    %c8_59 = arith.constant 8 : index
    %c0_60 = arith.constant 0 : index
    %156 = vector.load %arg5[%c8_59, %c0_60] : memref<16x64xf32, #tpu.memory_space<vmem>>, vector<2x32xf32>
    tpu.vector_store %arg5[%c8_59, %c0_60], %155 {strides = array<i32>} : memref<16x64xf32, #tpu.memory_space<vmem>>, vector<2x32xf32>,
    %c6_61 = arith.constant 6 : index
    %c32_62 = arith.constant 32 : index
    %157 = vector.load %arg5[%c6_61, %c32_62] : memref<16x64xf32, #tpu.memory_space<vmem>>, vector<2x32xf32>
    tpu.vector_store %arg5[%c6_61, %c32_62], %155 {strides = array<i32>} : memref<16x64xf32, #tpu.memory_space<vmem>>, vector<2x32xf32>,
    %158 = vector.extract_strided_slice %28 {offsets = [10, 0], sizes = [2, 128], strides = [1, 1]} : vector<16x128xf32> to vector<2x128xf32>
    %cst_63 = arith.constant dense<0.000000e+00> : vector<2x128xf32>
    %159 = tpu.matmul %155, %20, %cst_63 {dimension_numbers = #tpu.dot_dimension_numbers<[1], [0], [0], [1], [0, 0, 1, 1], [], []>} : vector<2x32xf32>, vector<32x128xf32>, vector<2x128xf32> -> vector<2x128xf32>
    %160 = arith.addf %158, %159 : vector<2x128xf32>
    %cst_64 = arith.constant 5.000000e-01 : f32
    %161 = vector.broadcast %cst_64 : f32 to vector<2x128xf32>
    %162 = arith.mulf %161, %160 : vector<2x128xf32>
    %163 = arith.select %34, %160, %162 : vector<2x128xi1>, vector<2x128xf32>
    %164 = math.tanh %163 : vector<2x128xf32>
    %cst_65 = arith.constant 5.000000e-01 : f32
    %165 = vector.broadcast %cst_65 : f32 to vector<2x128xf32>
    %166 = arith.mulf %165, %164 : vector<2x128xf32>
    %cst_66 = arith.constant 5.000000e-01 : f32
    %167 = vector.broadcast %cst_66 : f32 to vector<2x128xf32>
    %168 = arith.addf %166, %167 : vector<2x128xf32>
    %169 = arith.select %34, %164, %168 : vector<2x128xi1>, vector<2x128xf32>
    %c96_i32_67 = arith.constant 96 : i32
    %170 = tpu.dynamic_rotate %169 by %c96_i32_67 dim 1 : vector<2x128xf32>, i32 -> vector<2x128xf32>
    %c64_i32_68 = arith.constant 64 : i32
    %171 = tpu.dynamic_rotate %169 by %c64_i32_68 dim 1 : vector<2x128xf32>, i32 -> vector<2x128xf32>
    %c32_i32_69 = arith.constant 32 : i32
    %172 = tpu.dynamic_rotate %169 by %c32_i32_69 dim 1 : vector<2x128xf32>, i32 -> vector<2x128xf32>
    %173 = arith.mulf %170, %152 : vector<2x128xf32>
    %174 = arith.mulf %169, %171 : vector<2x128xf32>
    %175 = arith.addf %173, %174 : vector<2x128xf32>
    %176 = math.tanh %175 : vector<2x128xf32>
    %177 = arith.mulf %172, %176 : vector<2x128xf32>
    %178 = vector.extract_strided_slice %177 {offsets = [0, 0], sizes = [2, 32], strides = [1, 1]} : vector<2x128xf32> to vector<2x32xf32>
    %c10_70 = arith.constant 10 : index
    %c0_71 = arith.constant 0 : index
    %179 = vector.load %arg5[%c10_70, %c0_71] : memref<16x64xf32, #tpu.memory_space<vmem>>, vector<2x32xf32>
    tpu.vector_store %arg5[%c10_70, %c0_71], %178 {strides = array<i32>} : memref<16x64xf32, #tpu.memory_space<vmem>>, vector<2x32xf32>,
    %c4_72 = arith.constant 4 : index
    %c32_73 = arith.constant 32 : index
    %180 = vector.load %arg5[%c4_72, %c32_73] : memref<16x64xf32, #tpu.memory_space<vmem>>, vector<2x32xf32>
    tpu.vector_store %arg5[%c4_72, %c32_73], %178 {strides = array<i32>} : memref<16x64xf32, #tpu.memory_space<vmem>>, vector<2x32xf32>,
    %181 = vector.extract_strided_slice %28 {offsets = [12, 0], sizes = [2, 128], strides = [1, 1]} : vector<16x128xf32> to vector<2x128xf32>
    %cst_74 = arith.constant dense<0.000000e+00> : vector<2x128xf32>
    %182 = tpu.matmul %178, %20, %cst_74 {dimension_numbers = #tpu.dot_dimension_numbers<[1], [0], [0], [1], [0, 0, 1, 1], [], []>} : vector<2x32xf32>, vector<32x128xf32>, vector<2x128xf32> -> vector<2x128xf32>
    %183 = arith.addf %181, %182 : vector<2x128xf32>
    %cst_75 = arith.constant 5.000000e-01 : f32
    %184 = vector.broadcast %cst_75 : f32 to vector<2x128xf32>
    %185 = arith.mulf %184, %183 : vector<2x128xf32>
    %186 = arith.select %34, %183, %185 : vector<2x128xi1>, vector<2x128xf32>
    %187 = math.tanh %186 : vector<2x128xf32>
    %cst_76 = arith.constant 5.000000e-01 : f32
    %188 = vector.broadcast %cst_76 : f32 to vector<2x128xf32>
    %189 = arith.mulf %188, %187 : vector<2x128xf32>
    %cst_77 = arith.constant 5.000000e-01 : f32
    %190 = vector.broadcast %cst_77 : f32 to vector<2x128xf32>
    %191 = arith.addf %189, %190 : vector<2x128xf32>
    %192 = arith.select %34, %187, %191 : vector<2x128xi1>, vector<2x128xf32>
    %c96_i32_78 = arith.constant 96 : i32
    %193 = tpu.dynamic_rotate %192 by %c96_i32_78 dim 1 : vector<2x128xf32>, i32 -> vector<2x128xf32>
    %c64_i32_79 = arith.constant 64 : i32
    %194 = tpu.dynamic_rotate %192 by %c64_i32_79 dim 1 : vector<2x128xf32>, i32 -> vector<2x128xf32>
    %c32_i32_80 = arith.constant 32 : i32
    %195 = tpu.dynamic_rotate %192 by %c32_i32_80 dim 1 : vector<2x128xf32>, i32 -> vector<2x128xf32>
    %196 = arith.mulf %193, %175 : vector<2x128xf32>
    %197 = arith.mulf %192, %194 : vector<2x128xf32>
    %198 = arith.addf %196, %197 : vector<2x128xf32>
    %199 = math.tanh %198 : vector<2x128xf32>
    %200 = arith.mulf %195, %199 : vector<2x128xf32>
    %201 = vector.extract_strided_slice %200 {offsets = [0, 0], sizes = [2, 32], strides = [1, 1]} : vector<2x128xf32> to vector<2x32xf32>
    %c12_81 = arith.constant 12 : index
    %c0_82 = arith.constant 0 : index
    %202 = vector.load %arg5[%c12_81, %c0_82] : memref<16x64xf32, #tpu.memory_space<vmem>>, vector<2x32xf32>
    tpu.vector_store %arg5[%c12_81, %c0_82], %201 {strides = array<i32>} : memref<16x64xf32, #tpu.memory_space<vmem>>, vector<2x32xf32>,
    %c2_83 = arith.constant 2 : index
    %c32_84 = arith.constant 32 : index
    %203 = vector.load %arg5[%c2_83, %c32_84] : memref<16x64xf32, #tpu.memory_space<vmem>>, vector<2x32xf32>
    tpu.vector_store %arg5[%c2_83, %c32_84], %201 {strides = array<i32>} : memref<16x64xf32, #tpu.memory_space<vmem>>, vector<2x32xf32>,
    %204 = vector.extract_strided_slice %28 {offsets = [14, 0], sizes = [2, 128], strides = [1, 1]} : vector<16x128xf32> to vector<2x128xf32>
    %cst_85 = arith.constant dense<0.000000e+00> : vector<2x128xf32>
    %205 = tpu.matmul %201, %20, %cst_85 {dimension_numbers = #tpu.dot_dimension_numbers<[1], [0], [0], [1], [0, 0, 1, 1], [], []>} : vector<2x32xf32>, vector<32x128xf32>, vector<2x128xf32> -> vector<2x128xf32>
    %206 = arith.addf %204, %205 : vector<2x128xf32>
    %cst_86 = arith.constant 5.000000e-01 : f32
    %207 = vector.broadcast %cst_86 : f32 to vector<2x128xf32>
    %208 = arith.mulf %207, %206 : vector<2x128xf32>
    %209 = arith.select %34, %206, %208 : vector<2x128xi1>, vector<2x128xf32>
    %210 = math.tanh %209 : vector<2x128xf32>
    %cst_87 = arith.constant 5.000000e-01 : f32
    %211 = vector.broadcast %cst_87 : f32 to vector<2x128xf32>
    %212 = arith.mulf %211, %210 : vector<2x128xf32>
    %cst_88 = arith.constant 5.000000e-01 : f32
    %213 = vector.broadcast %cst_88 : f32 to vector<2x128xf32>
    %214 = arith.addf %212, %213 : vector<2x128xf32>
    %215 = arith.select %34, %210, %214 : vector<2x128xi1>, vector<2x128xf32>
    %c96_i32_89 = arith.constant 96 : i32
    %216 = tpu.dynamic_rotate %215 by %c96_i32_89 dim 1 : vector<2x128xf32>, i32 -> vector<2x128xf32>
    %c64_i32_90 = arith.constant 64 : i32
    %217 = tpu.dynamic_rotate %215 by %c64_i32_90 dim 1 : vector<2x128xf32>, i32 -> vector<2x128xf32>
    %c32_i32_91 = arith.constant 32 : i32
    %218 = tpu.dynamic_rotate %215 by %c32_i32_91 dim 1 : vector<2x128xf32>, i32 -> vector<2x128xf32>
    %219 = arith.mulf %216, %198 : vector<2x128xf32>
    %220 = arith.mulf %215, %217 : vector<2x128xf32>
    %221 = arith.addf %219, %220 : vector<2x128xf32>
    %222 = math.tanh %221 : vector<2x128xf32>
    %223 = arith.mulf %218, %222 : vector<2x128xf32>
    %224 = vector.extract_strided_slice %223 {offsets = [0, 0], sizes = [2, 32], strides = [1, 1]} : vector<2x128xf32> to vector<2x32xf32>
    %c14_92 = arith.constant 14 : index
    %c0_93 = arith.constant 0 : index
    %225 = vector.load %arg5[%c14_92, %c0_93] : memref<16x64xf32, #tpu.memory_space<vmem>>, vector<2x32xf32>
    tpu.vector_store %arg5[%c14_92, %c0_93], %224 {strides = array<i32>} : memref<16x64xf32, #tpu.memory_space<vmem>>, vector<2x32xf32>,
    %c0_94 = arith.constant 0 : index
    %c32_95 = arith.constant 32 : index
    %226 = vector.load %arg5[%c0_94, %c32_95] : memref<16x64xf32, #tpu.memory_space<vmem>>, vector<2x32xf32>
    tpu.vector_store %arg5[%c0_94, %c32_95], %224 {strides = array<i32>} : memref<16x64xf32, #tpu.memory_space<vmem>>, vector<2x32xf32>,
    %c0_96 = arith.constant 0 : index
    %c0_97 = arith.constant 0 : index
    %227 = vector.load %arg5[%c0_96, %c0_97] : memref<16x64xf32, #tpu.memory_space<vmem>>, vector<16x64xf32>
    %cst_98 = arith.constant dense<0.000000e+00> : vector<16x256xf32>
    %228 = tpu.matmul %227, %23, %cst_98 {dimension_numbers = #tpu.dot_dimension_numbers<[1], [0], [0], [1], [0, 0, 1, 1], [], []>} : vector<16x64xf32>, vector<64x256xf32>, vector<16x256xf32> -> vector<16x256xf32>
    %229 = vector.broadcast %25 : vector<1x256xf32> to vector<16x256xf32>
    %230 = arith.addf %228, %229 : vector<16x256xf32>
    %cst_99 = arith.constant 0.000000e+00 : f32
    %231 = vector.broadcast %cst_99 : f32 to vector<2x64xf32>
    %cst_100 = arith.constant 0.000000e+00 : f32
    %232 = vector.broadcast %cst_100 : f32 to vector<2x256xf32>
    %233 = vector.extract_strided_slice %230 {offsets = [0, 0], sizes = [2, 256], strides = [1, 1]} : vector<16x256xf32> to vector<2x256xf32>
    %cst_101 = arith.constant dense<0.000000e+00> : vector<2x256xf32>
    %234 = tpu.matmul %231, %24, %cst_101 {dimension_numbers = #tpu.dot_dimension_numbers<[1], [0], [0], [1], [0, 0, 1, 1], [], []>} : vector<2x64xf32>, vector<64x256xf32>, vector<2x256xf32> -> vector<2x256xf32>
    %235 = arith.addf %233, %234 : vector<2x256xf32>
    %cst_102 = arith.constant 5.000000e-01 : f32
    %236 = vector.broadcast %cst_102 : f32 to vector<2x256xf32>
    %237 = arith.mulf %236, %235 : vector<2x256xf32>
    %238 = arith.select %40, %235, %237 : vector<2x256xi1>, vector<2x256xf32>
    %239 = math.tanh %238 : vector<2x256xf32>
    %cst_103 = arith.constant 5.000000e-01 : f32
    %240 = vector.broadcast %cst_103 : f32 to vector<2x256xf32>
    %241 = arith.mulf %240, %239 : vector<2x256xf32>
    %cst_104 = arith.constant 5.000000e-01 : f32
    %242 = vector.broadcast %cst_104 : f32 to vector<2x256xf32>
    %243 = arith.addf %241, %242 : vector<2x256xf32>
    %244 = arith.select %40, %239, %243 : vector<2x256xi1>, vector<2x256xf32>
    %c192_i32_105 = arith.constant 192 : i32
    %245 = tpu.dynamic_rotate %244 by %c192_i32_105 dim 1 : vector<2x256xf32>, i32 -> vector<2x256xf32>
    %c128_i32_106 = arith.constant 128 : i32
    %246 = tpu.dynamic_rotate %244 by %c128_i32_106 dim 1 : vector<2x256xf32>, i32 -> vector<2x256xf32>
    %c64_i32_107 = arith.constant 64 : i32
    %247 = tpu.dynamic_rotate %244 by %c64_i32_107 dim 1 : vector<2x256xf32>, i32 -> vector<2x256xf32>
    %248 = arith.mulf %245, %232 : vector<2x256xf32>
    %249 = arith.mulf %244, %246 : vector<2x256xf32>
    %250 = arith.addf %248, %249 : vector<2x256xf32>
    %251 = math.tanh %250 : vector<2x256xf32>
    %252 = arith.mulf %247, %251 : vector<2x256xf32>
    %253 = vector.extract_strided_slice %252 {offsets = [0, 0], sizes = [2, 64], strides = [1, 1]} : vector<2x256xf32> to vector<2x64xf32>
    %c0_108 = arith.constant 0 : index
    %c0_109 = arith.constant 0 : index
    %254 = vector.load %arg6[%c0_108, %c0_109] : memref<2x512xf32, #tpu.memory_space<vmem>>, vector<2x64xf32>
    tpu.vector_store %arg6[%c0_108, %c0_109], %253 {strides = array<i32>} : memref<2x512xf32, #tpu.memory_space<vmem>>, vector<2x64xf32>,
    %255 = vector.extract_strided_slice %230 {offsets = [2, 0], sizes = [2, 256], strides = [1, 1]} : vector<16x256xf32> to vector<2x256xf32>
    %cst_110 = arith.constant dense<0.000000e+00> : vector<2x256xf32>
    %256 = tpu.matmul %253, %24, %cst_110 {dimension_numbers = #tpu.dot_dimension_numbers<[1], [0], [0], [1], [0, 0, 1, 1], [], []>} : vector<2x64xf32>, vector<64x256xf32>, vector<2x256xf32> -> vector<2x256xf32>
    %257 = arith.addf %255, %256 : vector<2x256xf32>
    %cst_111 = arith.constant 5.000000e-01 : f32
    %258 = vector.broadcast %cst_111 : f32 to vector<2x256xf32>
    %259 = arith.mulf %258, %257 : vector<2x256xf32>
    %260 = arith.select %40, %257, %259 : vector<2x256xi1>, vector<2x256xf32>
    %261 = math.tanh %260 : vector<2x256xf32>
    %cst_112 = arith.constant 5.000000e-01 : f32
    %262 = vector.broadcast %cst_112 : f32 to vector<2x256xf32>
    %263 = arith.mulf %262, %261 : vector<2x256xf32>
    %cst_113 = arith.constant 5.000000e-01 : f32
    %264 = vector.broadcast %cst_113 : f32 to vector<2x256xf32>
    %265 = arith.addf %263, %264 : vector<2x256xf32>
    %266 = arith.select %40, %261, %265 : vector<2x256xi1>, vector<2x256xf32>
    %c192_i32_114 = arith.constant 192 : i32
    %267 = tpu.dynamic_rotate %266 by %c192_i32_114 dim 1 : vector<2x256xf32>, i32 -> vector<2x256xf32>
    %c128_i32_115 = arith.constant 128 : i32
    %268 = tpu.dynamic_rotate %266 by %c128_i32_115 dim 1 : vector<2x256xf32>, i32 -> vector<2x256xf32>
    %c64_i32_116 = arith.constant 64 : i32
    %269 = tpu.dynamic_rotate %266 by %c64_i32_116 dim 1 : vector<2x256xf32>, i32 -> vector<2x256xf32>
    %270 = arith.mulf %267, %250 : vector<2x256xf32>
    %271 = arith.mulf %266, %268 : vector<2x256xf32>
    %272 = arith.addf %270, %271 : vector<2x256xf32>
    %273 = math.tanh %272 : vector<2x256xf32>
    %274 = arith.mulf %269, %273 : vector<2x256xf32>
    %275 = vector.extract_strided_slice %274 {offsets = [0, 0], sizes = [2, 64], strides = [1, 1]} : vector<2x256xf32> to vector<2x64xf32>
    %c0_117 = arith.constant 0 : index
    %c64_118 = arith.constant 64 : index
    %276 = vector.load %arg6[%c0_117, %c64_118] : memref<2x512xf32, #tpu.memory_space<vmem>>, vector<2x64xf32>
    tpu.vector_store %arg6[%c0_117, %c64_118], %275 {strides = array<i32>} : memref<2x512xf32, #tpu.memory_space<vmem>>, vector<2x64xf32>,
    %277 = vector.extract_strided_slice %230 {offsets = [4, 0], sizes = [2, 256], strides = [1, 1]} : vector<16x256xf32> to vector<2x256xf32>
    %cst_119 = arith.constant dense<0.000000e+00> : vector<2x256xf32>
    %278 = tpu.matmul %275, %24, %cst_119 {dimension_numbers = #tpu.dot_dimension_numbers<[1], [0], [0], [1], [0, 0, 1, 1], [], []>} : vector<2x64xf32>, vector<64x256xf32>, vector<2x256xf32> -> vector<2x256xf32>
    %279 = arith.addf %277, %278 : vector<2x256xf32>
    %cst_120 = arith.constant 5.000000e-01 : f32
    %280 = vector.broadcast %cst_120 : f32 to vector<2x256xf32>
    %281 = arith.mulf %280, %279 : vector<2x256xf32>
    %282 = arith.select %40, %279, %281 : vector<2x256xi1>, vector<2x256xf32>
    %283 = math.tanh %282 : vector<2x256xf32>
    %cst_121 = arith.constant 5.000000e-01 : f32
    %284 = vector.broadcast %cst_121 : f32 to vector<2x256xf32>
    %285 = arith.mulf %284, %283 : vector<2x256xf32>
    %cst_122 = arith.constant 5.000000e-01 : f32
    %286 = vector.broadcast %cst_122 : f32 to vector<2x256xf32>
    %287 = arith.addf %285, %286 : vector<2x256xf32>
    %288 = arith.select %40, %283, %287 : vector<2x256xi1>, vector<2x256xf32>
    %c192_i32_123 = arith.constant 192 : i32
    %289 = tpu.dynamic_rotate %288 by %c192_i32_123 dim 1 : vector<2x256xf32>, i32 -> vector<2x256xf32>
    %c128_i32_124 = arith.constant 128 : i32
    %290 = tpu.dynamic_rotate %288 by %c128_i32_124 dim 1 : vector<2x256xf32>, i32 -> vector<2x256xf32>
    %c64_i32_125 = arith.constant 64 : i32
    %291 = tpu.dynamic_rotate %288 by %c64_i32_125 dim 1 : vector<2x256xf32>, i32 -> vector<2x256xf32>
    %292 = arith.mulf %289, %272 : vector<2x256xf32>
    %293 = arith.mulf %288, %290 : vector<2x256xf32>
    %294 = arith.addf %292, %293 : vector<2x256xf32>
    %295 = math.tanh %294 : vector<2x256xf32>
    %296 = arith.mulf %291, %295 : vector<2x256xf32>
    %297 = vector.extract_strided_slice %296 {offsets = [0, 0], sizes = [2, 64], strides = [1, 1]} : vector<2x256xf32> to vector<2x64xf32>
    %c0_126 = arith.constant 0 : index
    %c128_127 = arith.constant 128 : index
    %298 = vector.load %arg6[%c0_126, %c128_127] : memref<2x512xf32, #tpu.memory_space<vmem>>, vector<2x64xf32>
    tpu.vector_store %arg6[%c0_126, %c128_127], %297 {strides = array<i32>} : memref<2x512xf32, #tpu.memory_space<vmem>>, vector<2x64xf32>,
    %299 = vector.extract_strided_slice %230 {offsets = [6, 0], sizes = [2, 256], strides = [1, 1]} : vector<16x256xf32> to vector<2x256xf32>
    %cst_128 = arith.constant dense<0.000000e+00> : vector<2x256xf32>
    %300 = tpu.matmul %297, %24, %cst_128 {dimension_numbers = #tpu.dot_dimension_numbers<[1], [0], [0], [1], [0, 0, 1, 1], [], []>} : vector<2x64xf32>, vector<64x256xf32>, vector<2x256xf32> -> vector<2x256xf32>
    %301 = arith.addf %299, %300 : vector<2x256xf32>
    %cst_129 = arith.constant 5.000000e-01 : f32
    %302 = vector.broadcast %cst_129 : f32 to vector<2x256xf32>
    %303 = arith.mulf %302, %301 : vector<2x256xf32>
    %304 = arith.select %40, %301, %303 : vector<2x256xi1>, vector<2x256xf32>
    %305 = math.tanh %304 : vector<2x256xf32>
    %cst_130 = arith.constant 5.000000e-01 : f32
    %306 = vector.broadcast %cst_130 : f32 to vector<2x256xf32>
    %307 = arith.mulf %306, %305 : vector<2x256xf32>
    %cst_131 = arith.constant 5.000000e-01 : f32
    %308 = vector.broadcast %cst_131 : f32 to vector<2x256xf32>
    %309 = arith.addf %307, %308 : vector<2x256xf32>
    %310 = arith.select %40, %305, %309 : vector<2x256xi1>, vector<2x256xf32>
    %c192_i32_132 = arith.constant 192 : i32
    %311 = tpu.dynamic_rotate %310 by %c192_i32_132 dim 1 : vector<2x256xf32>, i32 -> vector<2x256xf32>
    %c128_i32_133 = arith.constant 128 : i32
    %312 = tpu.dynamic_rotate %310 by %c128_i32_133 dim 1 : vector<2x256xf32>, i32 -> vector<2x256xf32>
    %c64_i32_134 = arith.constant 64 : i32
    %313 = tpu.dynamic_rotate %310 by %c64_i32_134 dim 1 : vector<2x256xf32>, i32 -> vector<2x256xf32>
    %314 = arith.mulf %311, %294 : vector<2x256xf32>
    %315 = arith.mulf %310, %312 : vector<2x256xf32>
    %316 = arith.addf %314, %315 : vector<2x256xf32>
    %317 = math.tanh %316 : vector<2x256xf32>
    %318 = arith.mulf %313, %317 : vector<2x256xf32>
    %319 = vector.extract_strided_slice %318 {offsets = [0, 0], sizes = [2, 64], strides = [1, 1]} : vector<2x256xf32> to vector<2x64xf32>
    %c0_135 = arith.constant 0 : index
    %c192 = arith.constant 192 : index
    %320 = vector.load %arg6[%c0_135, %c192] : memref<2x512xf32, #tpu.memory_space<vmem>>, vector<2x64xf32>
    tpu.vector_store %arg6[%c0_135, %c192], %319 {strides = array<i32>} : memref<2x512xf32, #tpu.memory_space<vmem>>, vector<2x64xf32>,
    %321 = vector.extract_strided_slice %230 {offsets = [8, 0], sizes = [2, 256], strides = [1, 1]} : vector<16x256xf32> to vector<2x256xf32>
    %cst_136 = arith.constant dense<0.000000e+00> : vector<2x256xf32>
    %322 = tpu.matmul %319, %24, %cst_136 {dimension_numbers = #tpu.dot_dimension_numbers<[1], [0], [0], [1], [0, 0, 1, 1], [], []>} : vector<2x64xf32>, vector<64x256xf32>, vector<2x256xf32> -> vector<2x256xf32>
    %323 = arith.addf %321, %322 : vector<2x256xf32>
    %cst_137 = arith.constant 5.000000e-01 : f32
    %324 = vector.broadcast %cst_137 : f32 to vector<2x256xf32>
    %325 = arith.mulf %324, %323 : vector<2x256xf32>
    %326 = arith.select %40, %323, %325 : vector<2x256xi1>, vector<2x256xf32>
    %327 = math.tanh %326 : vector<2x256xf32>
    %cst_138 = arith.constant 5.000000e-01 : f32
    %328 = vector.broadcast %cst_138 : f32 to vector<2x256xf32>
    %329 = arith.mulf %328, %327 : vector<2x256xf32>
    %cst_139 = arith.constant 5.000000e-01 : f32
    %330 = vector.broadcast %cst_139 : f32 to vector<2x256xf32>
    %331 = arith.addf %329, %330 : vector<2x256xf32>
    %332 = arith.select %40, %327, %331 : vector<2x256xi1>, vector<2x256xf32>
    %c192_i32_140 = arith.constant 192 : i32
    %333 = tpu.dynamic_rotate %332 by %c192_i32_140 dim 1 : vector<2x256xf32>, i32 -> vector<2x256xf32>
    %c128_i32_141 = arith.constant 128 : i32
    %334 = tpu.dynamic_rotate %332 by %c128_i32_141 dim 1 : vector<2x256xf32>, i32 -> vector<2x256xf32>
    %c64_i32_142 = arith.constant 64 : i32
    %335 = tpu.dynamic_rotate %332 by %c64_i32_142 dim 1 : vector<2x256xf32>, i32 -> vector<2x256xf32>
    %336 = arith.mulf %333, %316 : vector<2x256xf32>
    %337 = arith.mulf %332, %334 : vector<2x256xf32>
    %338 = arith.addf %336, %337 : vector<2x256xf32>
    %339 = math.tanh %338 : vector<2x256xf32>
    %340 = arith.mulf %335, %339 : vector<2x256xf32>
    %341 = vector.extract_strided_slice %340 {offsets = [0, 0], sizes = [2, 64], strides = [1, 1]} : vector<2x256xf32> to vector<2x64xf32>
    %c0_143 = arith.constant 0 : index
    %c256 = arith.constant 256 : index
    %342 = vector.load %arg6[%c0_143, %c256] : memref<2x512xf32, #tpu.memory_space<vmem>>, vector<2x64xf32>
    tpu.vector_store %arg6[%c0_143, %c256], %341 {strides = array<i32>} : memref<2x512xf32, #tpu.memory_space<vmem>>, vector<2x64xf32>,
    %343 = vector.extract_strided_slice %230 {offsets = [10, 0], sizes = [2, 256], strides = [1, 1]} : vector<16x256xf32> to vector<2x256xf32>
    %cst_144 = arith.constant dense<0.000000e+00> : vector<2x256xf32>
    %344 = tpu.matmul %341, %24, %cst_144 {dimension_numbers = #tpu.dot_dimension_numbers<[1], [0], [0], [1], [0, 0, 1, 1], [], []>} : vector<2x64xf32>, vector<64x256xf32>, vector<2x256xf32> -> vector<2x256xf32>
    %345 = arith.addf %343, %344 : vector<2x256xf32>
    %cst_145 = arith.constant 5.000000e-01 : f32
    %346 = vector.broadcast %cst_145 : f32 to vector<2x256xf32>
    %347 = arith.mulf %346, %345 : vector<2x256xf32>
    %348 = arith.select %40, %345, %347 : vector<2x256xi1>, vector<2x256xf32>
    %349 = math.tanh %348 : vector<2x256xf32>
    %cst_146 = arith.constant 5.000000e-01 : f32
    %350 = vector.broadcast %cst_146 : f32 to vector<2x256xf32>
    %351 = arith.mulf %350, %349 : vector<2x256xf32>
    %cst_147 = arith.constant 5.000000e-01 : f32
    %352 = vector.broadcast %cst_147 : f32 to vector<2x256xf32>
    %353 = arith.addf %351, %352 : vector<2x256xf32>
    %354 = arith.select %40, %349, %353 : vector<2x256xi1>, vector<2x256xf32>
    %c192_i32_148 = arith.constant 192 : i32
    %355 = tpu.dynamic_rotate %354 by %c192_i32_148 dim 1 : vector<2x256xf32>, i32 -> vector<2x256xf32>
    %c128_i32_149 = arith.constant 128 : i32
    %356 = tpu.dynamic_rotate %354 by %c128_i32_149 dim 1 : vector<2x256xf32>, i32 -> vector<2x256xf32>
    %c64_i32_150 = arith.constant 64 : i32
    %357 = tpu.dynamic_rotate %354 by %c64_i32_150 dim 1 : vector<2x256xf32>, i32 -> vector<2x256xf32>
    %358 = arith.mulf %355, %338 : vector<2x256xf32>
    %359 = arith.mulf %354, %356 : vector<2x256xf32>
    %360 = arith.addf %358, %359 : vector<2x256xf32>
    %361 = math.tanh %360 : vector<2x256xf32>
    %362 = arith.mulf %357, %361 : vector<2x256xf32>
    %363 = vector.extract_strided_slice %362 {offsets = [0, 0], sizes = [2, 64], strides = [1, 1]} : vector<2x256xf32> to vector<2x64xf32>
    %c0_151 = arith.constant 0 : index
    %c320 = arith.constant 320 : index
    %364 = vector.load %arg6[%c0_151, %c320] : memref<2x512xf32, #tpu.memory_space<vmem>>, vector<2x64xf32>
    tpu.vector_store %arg6[%c0_151, %c320], %363 {strides = array<i32>} : memref<2x512xf32, #tpu.memory_space<vmem>>, vector<2x64xf32>,
    %365 = vector.extract_strided_slice %230 {offsets = [12, 0], sizes = [2, 256], strides = [1, 1]} : vector<16x256xf32> to vector<2x256xf32>
    %cst_152 = arith.constant dense<0.000000e+00> : vector<2x256xf32>
    %366 = tpu.matmul %363, %24, %cst_152 {dimension_numbers = #tpu.dot_dimension_numbers<[1], [0], [0], [1], [0, 0, 1, 1], [], []>} : vector<2x64xf32>, vector<64x256xf32>, vector<2x256xf32> -> vector<2x256xf32>
    %367 = arith.addf %365, %366 : vector<2x256xf32>
    %cst_153 = arith.constant 5.000000e-01 : f32
    %368 = vector.broadcast %cst_153 : f32 to vector<2x256xf32>
    %369 = arith.mulf %368, %367 : vector<2x256xf32>
    %370 = arith.select %40, %367, %369 : vector<2x256xi1>, vector<2x256xf32>
    %371 = math.tanh %370 : vector<2x256xf32>
    %cst_154 = arith.constant 5.000000e-01 : f32
    %372 = vector.broadcast %cst_154 : f32 to vector<2x256xf32>
    %373 = arith.mulf %372, %371 : vector<2x256xf32>
    %cst_155 = arith.constant 5.000000e-01 : f32
    %374 = vector.broadcast %cst_155 : f32 to vector<2x256xf32>
    %375 = arith.addf %373, %374 : vector<2x256xf32>
    %376 = arith.select %40, %371, %375 : vector<2x256xi1>, vector<2x256xf32>
    %c192_i32_156 = arith.constant 192 : i32
    %377 = tpu.dynamic_rotate %376 by %c192_i32_156 dim 1 : vector<2x256xf32>, i32 -> vector<2x256xf32>
    %c128_i32_157 = arith.constant 128 : i32
    %378 = tpu.dynamic_rotate %376 by %c128_i32_157 dim 1 : vector<2x256xf32>, i32 -> vector<2x256xf32>
    %c64_i32_158 = arith.constant 64 : i32
    %379 = tpu.dynamic_rotate %376 by %c64_i32_158 dim 1 : vector<2x256xf32>, i32 -> vector<2x256xf32>
    %380 = arith.mulf %377, %360 : vector<2x256xf32>
    %381 = arith.mulf %376, %378 : vector<2x256xf32>
    %382 = arith.addf %380, %381 : vector<2x256xf32>
    %383 = math.tanh %382 : vector<2x256xf32>
    %384 = arith.mulf %379, %383 : vector<2x256xf32>
    %385 = vector.extract_strided_slice %384 {offsets = [0, 0], sizes = [2, 64], strides = [1, 1]} : vector<2x256xf32> to vector<2x64xf32>
    %c0_159 = arith.constant 0 : index
    %c384 = arith.constant 384 : index
    %386 = vector.load %arg6[%c0_159, %c384] : memref<2x512xf32, #tpu.memory_space<vmem>>, vector<2x64xf32>
    tpu.vector_store %arg6[%c0_159, %c384], %385 {strides = array<i32>} : memref<2x512xf32, #tpu.memory_space<vmem>>, vector<2x64xf32>,
    %387 = vector.extract_strided_slice %230 {offsets = [14, 0], sizes = [2, 256], strides = [1, 1]} : vector<16x256xf32> to vector<2x256xf32>
    %cst_160 = arith.constant dense<0.000000e+00> : vector<2x256xf32>
    %388 = tpu.matmul %385, %24, %cst_160 {dimension_numbers = #tpu.dot_dimension_numbers<[1], [0], [0], [1], [0, 0, 1, 1], [], []>} : vector<2x64xf32>, vector<64x256xf32>, vector<2x256xf32> -> vector<2x256xf32>
    %389 = arith.addf %387, %388 : vector<2x256xf32>
    %cst_161 = arith.constant 5.000000e-01 : f32
    %390 = vector.broadcast %cst_161 : f32 to vector<2x256xf32>
    %391 = arith.mulf %390, %389 : vector<2x256xf32>
    %392 = arith.select %40, %389, %391 : vector<2x256xi1>, vector<2x256xf32>
    %393 = math.tanh %392 : vector<2x256xf32>
    %cst_162 = arith.constant 5.000000e-01 : f32
    %394 = vector.broadcast %cst_162 : f32 to vector<2x256xf32>
    %395 = arith.mulf %394, %393 : vector<2x256xf32>
    %cst_163 = arith.constant 5.000000e-01 : f32
    %396 = vector.broadcast %cst_163 : f32 to vector<2x256xf32>
    %397 = arith.addf %395, %396 : vector<2x256xf32>
    %398 = arith.select %40, %393, %397 : vector<2x256xi1>, vector<2x256xf32>
    %c192_i32_164 = arith.constant 192 : i32
    %399 = tpu.dynamic_rotate %398 by %c192_i32_164 dim 1 : vector<2x256xf32>, i32 -> vector<2x256xf32>
    %c128_i32_165 = arith.constant 128 : i32
    %400 = tpu.dynamic_rotate %398 by %c128_i32_165 dim 1 : vector<2x256xf32>, i32 -> vector<2x256xf32>
    %c64_i32_166 = arith.constant 64 : i32
    %401 = tpu.dynamic_rotate %398 by %c64_i32_166 dim 1 : vector<2x256xf32>, i32 -> vector<2x256xf32>
    %402 = arith.mulf %399, %382 : vector<2x256xf32>
    %403 = arith.mulf %398, %400 : vector<2x256xf32>
    %404 = arith.addf %402, %403 : vector<2x256xf32>
    %405 = math.tanh %404 : vector<2x256xf32>
    %406 = arith.mulf %401, %405 : vector<2x256xf32>
    %407 = vector.extract_strided_slice %406 {offsets = [0, 0], sizes = [2, 64], strides = [1, 1]} : vector<2x256xf32> to vector<2x64xf32>
    %c0_167 = arith.constant 0 : index
    %c448 = arith.constant 448 : index
    %408 = vector.load %arg6[%c0_167, %c448] : memref<2x512xf32, #tpu.memory_space<vmem>>, vector<2x64xf32>
    tpu.vector_store %arg6[%c0_167, %c448], %407 {strides = array<i32>} : memref<2x512xf32, #tpu.memory_space<vmem>>, vector<2x64xf32>,
    tpu.wait_dma2 semaphore(%arg8 : memref<!tpu.dma_semaphore, #tpu.memory_space<semaphore_mem>>) src(%arg3 : memref<512x128xf32, #tpu.memory_space<any>>) dst(%arg7 : memref<512x128xf32, #tpu.memory_space<vmem>>)
    %c0_168 = arith.constant 0 : index
    %c0_169 = arith.constant 0 : index
    %409 = vector.load %arg6[%c0_168, %c0_169] : memref<2x512xf32, #tpu.memory_space<vmem>>, vector<2x512xf32>
    %c0_170 = arith.constant 0 : index
    %c0_171 = arith.constant 0 : index
    %410 = vector.load %arg7[%c0_170, %c0_171] : memref<512x128xf32, #tpu.memory_space<vmem>>, vector<512x128xf32>
    %cst_172 = arith.constant dense<0.000000e+00> : vector<2x128xf32>
    %411 = tpu.matmul %409, %410, %cst_172 {dimension_numbers = #tpu.dot_dimension_numbers<[1], [0], [0], [1], [0, 0, 1, 1], [], []>} : vector<2x512xf32>, vector<512x128xf32>, vector<2x128xf32> -> vector<2x128xf32>
    %412 = vector.broadcast %22 : vector<1x128xf32> to vector<2x128xf32>
    %413 = arith.addf %411, %412 : vector<2x128xf32>
    %c0_173 = arith.constant 0 : index
    %c0_174 = arith.constant 0 : index
    %414 = vector.load %arg4[%c0_173, %c0_174] : memref<2x128xf32, #tpu.memory_space<vmem>>, vector<2x128xf32>
    tpu.vector_store %arg4[%c0_173, %c0_174], %413 {strides = array<i32>} : memref<2x128xf32, #tpu.memory_space<vmem>>, vector<2x128xf32>,
    return
  }
}

</mosaic_0001>

<bundles_post_ra>
// kernel: doppler_bilstm.1
= control target key start
LH: loop header
LB: loop body
LE: loop exit
PB: predicated region body
PF: predicated region fallthrough
CT: control target
= control target key end

     0   :  { %9 = vsyncpa [#allocation7], 0  ;;  %s3435_s0 = inlined_call_operand.vmem [shape: f32[16,16], index: 0, kind: input, shape index: {}]   ;;  %s3436_s1 = inlined_call_operand.hbm [shape: f32[64,128], index: 1, kind: input, shape index: {}]   ;;  %s3437_s2 = inlined_call_operand.hbm [shape: f32[136,256], index: 2, kind: input, shape index: {}]   ;;  %s3438_s3 = inlined_call_operand.hbm [shape: f32[512,128], index: 3, kind: input, shape index: {}]   ;;  %s3439_s4 = inlined_call_operand.hbm [shape: f32[2,128], index: 4, kind: output, shape index: {}]  }
   0x1   :  { %10 = vsyncpa [#allocation10], 0 }
   0x2   :  { %11 = vsyncpa [#allocation8], 0  ;;  %s2784_s15 = smov [#allocation6]  }
   0x3   :  { %s19_s16 = sshll.u32 %s2784_s15, 4  ;;  %s20_s16 = int_to_ptr.vmem [resolvable:$true] %s19_s16 }
   0x4   :  { %s2704_s17 = scalar_lea.vmem %s20_s16, 1024  ;;  %p2709_p1 = scmp.lt.s32.totalorder %s20_s16, %s20_s16 }
   0x5   :  { %p2705_p0 = scmp.ne.s32.totalorder %s20_s16, %s2704_s17  ;;  %p2710_p2 = scmp.lt.s32.totalorder %s2704_s17, %s2704_s17 }
   0x7   :  { %p2711_p3 = por %p2710_p2, %p2709_p1 }
   0x9   :  { %p2712_p4 = pnand %p2711_p3, %p2705_p0 }
   0xb   :  { %2715 = shalt.err (!%p2712_p4)
}
   0xc   :  { %s2785_s18 = smov 128   ;;  %s2786_s19 = smov 8  }
   0xd   :  { %25 = dma.hbm_to_vmem [thread:$0]  %s3436_s1, 1024, %s20_s16, [#allocation7], %s2785_s18, %s2785_s18, %s2786_s19  }
   0xe   :  { %s2787_s22 = smov [#allocation9]  }
   0xf   :  { %s31_s23 = sshll.u32 %s2787_s22, 4  ;;  %s32_s23 = int_to_ptr.vmem [resolvable:$true] %s31_s23 }
  0x10   :  { %s2724_s24 = scalar_lea.vmem %s32_s23, 4352  ;;  %p2729_p6 = scmp.lt.s32.totalorder %s32_s23, %s32_s23 }
  0x11   :  { %p2725_p5 = scmp.ne.s32.totalorder %s32_s23, %s2724_s24  ;;  %p2730_p7 = scmp.lt.s32.totalorder %s2724_s24, %s2724_s24 }
  0x13   :  { %p2731_p8 = por %p2730_p7, %p2729_p6 }
  0x15   :  { %p2732_p9 = pnand %p2731_p8, %p2725_p5 }
  0x17   :  { %2735 = shalt.err (!%p2732_p9)
}
  0x18   :  { %s2788_s25 = smov 256   ;;  %s2789_s26 = smov 16  }
  0x19   :  { %37 = dma.hbm_to_vmem [thread:$0]  %s3437_s2, 4352, %s32_s23, [#allocation10], %s2788_s25, %s2788_s25, %s2789_s26  }
  0x1a   :  { %2776 = dma.done.wait [#allocation7], 1024  }
  0x1b   :  { %2777 = vsyncadd [#allocation7], 4294966272 }
  0x1c   :  { %2778 = dma.done.wait [#allocation10], 4352  }
  0x1d   :  { %2779 = vsyncadd [#allocation10], 4294962944  ;;  %v2790_v0 = vmov 0.0   ;;  %vm2791_vm0 = vmmov 0   ;;  %vm57_vm1 = vcmask 130048   ;;  %v88_v2 = vld [vmem:[#allocation6 + $0x8] sm:$0xff]  ;;  %v214_v39 = vlaneseq }
  0x1e   :  { %2533 = vmatprep.subr.mxu1 %v2790_v0  ;;  %2541 = vmatprep.mubr.msk.f32.mxu1 %vm2791_vm0, %v2790_v0  ;;  %v2832_v1 = vld [vmem:[#allocation6 + $0x38] ss:$0 sm:$0xff]  ;;  %v87_v3 = vld [vmem:[#allocation6] sm:$0xff]  ;;  %v55_v4 = vld [vmem:[%s3435_s0] sm:$0xff]  ;;  %s2793_s5 = smov 96   ;;  %s2794_s6 = smov 64  }
  0x1f   :  { %2504 = vmatprep.subr.mxu0 %v88_v2  ;;  %v56_v5 = vld [vmem:[%s3435_s0 + $0x8] sm:$0xff]  ;;  %v2840_v6 = vld [vmem:[#allocation6 + $0x28] sm:$0xff]  ;;  %v58_v7 = vsel %vm57_vm1, %v55_v4, 0.0  ;;  %v2845_v10 = vld [vmem:[#allocation6 + $0x20] sm:$0xff]  ;;  %v2887_v42 = vand.u32 127, %v214_v39  ;;  %s2792_s0 = smov 32  }
  0x20   :  { %2505 = vmatpush3.msra.mxu0 %v88_v2  ;;  %v59_v8 = vsel %vm57_vm1, %v56_v5, 0.0  ;;  %2534 = vmatpush3.msra.mxu1 %v2840_v6  ;;  %v2850_v12 = vld [vmem:[#allocation6 + $0x18] sm:$0xff]  ;;  %v2854_v14 = vld [vmem:[#allocation6 + $0x10] sm:$0xff]  ;;  %vm226_vm5 = vcmask 261120   ;;  %vm318_vm6 = vcmask 254976   ;;  %vm324_vm7 = vcmask 517376  }
  0x21   :  { %2506 = vmatprep.subr.mxu0 %v87_v3  ;;  %v60_v9 = vadd.f32 %v59_v8, %v58_v7  ;;  %2535 = vmatprep.subr.mxu1 %v2790_v0  ;;  %v2369_v38 = vld [vmem:[#allocation6 + $0x30] ss:$0 sm:$0xff]  ;;  %vm216_vm2 = vcmp.ge.s32.totalorder %v2887_v42, 64  ;;  %vm217_vm3 = vcmp.lt.s32.totalorder %v2887_v42, 96  ;;  %vm1083_vm8 = vcmask 523264   ;;  %s2796_s7 = smov [#allocation4]  }
  0x22   :  { %2507 = vmatpush3.msra.mxu0 %v87_v3  ;;  %2536 = vmatpush3.msra.mxu1 %v2845_v10  ;;  %vm2894_vm4 = vmand %vm216_vm2, %vm217_vm3  ;;  %v109_v47 = vld [vmem:[#allocation9 + $0x70] sm:$0xff]  ;;  %vm1258_vm10 = vcmp.lt.s32.totalorder %v2887_v42, 64  ;;  %vm1266_vm11 = vcmask 517120   ;;  %vm1395_vm12 = vcmask 1041920   ;;  %s51_s8 = sshll.u32 %s2796_s7, 4  ;;  %s52_s8 = int_to_ptr.vmem [resolvable:$true] %s51_s8 }
  0x23   :  { %v61_v11 = vrot.slane %v60_v9, 4  ;;  %2511 = vmatprep.subr.mxu0 %v2790_v0  ;;  %2537 = vmatprep.subr.mxu1 %v2790_v0  ;;  %s2744_s9 = scalar_lea.vmem %s52_s8, 8192  ;;  %p2749_p11 = scmp.lt.s32.totalorder %s52_s8, %s52_s8 }
  0x24   :  { %2538 = vmatpush3.msra.mxu1 %v2850_v12  ;;  %p2745_p10 = scmp.ne.s32.totalorder %s52_s8, %s2744_s9  ;;  %p2750_p12 = scmp.lt.s32.totalorder %s2744_s9, %s2744_s9 }
  0x25   :  { %v62_v13 = vadd.f32 %v61_v11, %v60_v9  ;;  %2539 = vmatprep.subr.mxu1 %v2790_v0 }
  0x26   :  { %2540 = vmatpush3.msra.mxu1 %v2854_v14  ;;  %p2751_p13 = por %p2750_p12, %p2749_p11 }
  0x27   :  { %v63_v15 = vrot.slane %v62_v13, 2  ;;  %2555 = vmatprep.subr.mxu1 %v2790_v0 }
  0x28   :  { %p2752_p0 = pnand %p2751_p13, %p2745_p10 }
  0x29   :  { %v64_v16 = vadd.f32 %v63_v15, %v62_v13 }
  0x2b   :  { %v65_v17 = vrot.slane %v64_v16, 1 }
  0x2d   :  { %v66_v18 = vadd.f32 %v65_v17, %v64_v16 }
  0x2f   :  { %v68_v19 = vmul.f32 0.0625, %v66_v18 }
  0x31   :  { %v69_v20 = vsub.f32 %v55_v4, %v68_v19  ;;  %v70_v21 = vsub.f32 %v56_v5, %v68_v19 }
  0x33   :  { %v71_v22 = vmul.f32 %v69_v20, %v69_v20  ;;  %v72_v23 = vmul.f32 %v70_v21, %v70_v21 }
  0x35   :  { %v73_v24 = vsel %vm57_vm1, %v71_v22, 0.0  ;;  %v74_v25 = vsel %vm57_vm1, %v72_v23, 0.0 }
  0x36   :  { %v75_v26 = vadd.f32 %v74_v25, %v73_v24 }
  0x38   :  { %v76_v27 = vrot.slane %v75_v26, 4 }
  0x3a   :  { %v77_v28 = vadd.f32 %v76_v27, %v75_v26 }
  0x3c   :  { %v78_v29 = vrot.slane %v77_v28, 2 }
  0x3e   :  { %v79_v30 = vadd.f32 %v78_v29, %v77_v28 }
  0x40   :  { %v80_v31 = vrot.slane %v79_v30, 1 }
  0x42   :  { %v81_v32 = vadd.f32 %v80_v31, %v79_v30 }
  0x44   :  { %v82_v33 = vmul.f32 0.0625, %v81_v32 }
  0x46   :  { %v83_v34 = vadd.f32 1e-05, %v82_v33 }
  0x48   :  { %2613 = vrsqrt.f32 %v83_v34 }
  0x55   :  { %v2614_v35 = vpop.eup %2613 }
  0x56   :  { %v85_v36 = vmul.f32 %v2614_v35, %v69_v20  ;;  %v86_v37 = vmul.f32 %v2614_v35, %v70_v21 }
  0x58   :  { %2508 = vmatprep.mubr.msk.f32.mxu0 %vm57_vm1, %v85_v36 }
  0x59   :  { %2509 = vmatmul.mubr.msk.f32.vlgmr.msra.gmra.mxu0 %vm57_vm1, %v86_v37 }
  0x5a   :  { %2512 = vmatpush3.msra.mxu0 %v2840_v6  ;;  %2519 = vmatprep.mubr.msk.f32.mxu0 %vm2791_vm0, %v2790_v0 }
  0x5b   :  { %2513 = vmatprep.subr.mxu0 %v2790_v0 }
  0x5c   :  { %2514 = vmatpush3.msra.mxu0 %v2845_v10 }
  0x5d   :  { %2515 = vmatprep.subr.mxu0 %v2790_v0 }
  0x5e   :  { %2516 = vmatpush3.msra.mxu0 %v2850_v12 }
  0x5f   :  { %2517 = vmatprep.subr.mxu0 %v2790_v0 }
  0x60   :  { %2518 = vmatpush3.msra.mxu0 %v2854_v14 }
  0x61   :  { %2520 = vmatmul.mubr.f32.vlgmr.msra.gmra.mxu0 %v2790_v0  ;;  %2522 = vmatprep.subr.mxu0 %v2790_v0 }
  0x62   :  { %2523 = vmatpush3.msra.mxu0 %v2840_v6  ;;  %2530 = vmatprep.mubr.msk.f32.mxu0 %vm2791_vm0, %v2790_v0 }
  0x63   :  { %2524 = vmatprep.subr.mxu0 %v2790_v0 }
  0x64   :  { %2525 = vmatpush3.msra.mxu0 %v2845_v10 }
  0x65   :  { %2526 = vmatprep.subr.mxu0 %v2790_v0 }
  0x66   :  { %2527 = vmatpush3.msra.mxu0 %v2850_v12 }
  0x67   :  { %2528 = vmatprep.subr.mxu0 %v2790_v0 }
  0x68   :  { %2529 = vmatpush3.msra.mxu0 %v2854_v14 }
  0x69   :  { %2544 = vmatprep.subr.mxu0 %v2790_v0 }
 0x119   :  { %v2510_v40 = vpop.f32.mrf.mxu0 }
 0x11a   :  { %v2884_v41 = vadd.f32 %v2510_v40, %v2369_v38 }
 0x11b   :  { %v205_v43 = vpop.f32.mrf.mxu0 }
 0x11c   :  { %v2889_v44 = vadd.f32 %v2369_v38, %v205_v43 }
 0x121   :  { %v296_v45 = vpop.f32.mrf.mxu0 }
 0x122   :  { %v300_v46 = vadd.f32 %v296_v45, %v2889_v44 }
 0x123   :  { %v2521_v48 = vpop.f32.mrf.mxu0 }
 0x124   :  { %v301_v49 = vmul.f32 0.5, %v300_v46 }
 0x126   :  { %v302_v50 = vsel %vm2894_vm4, %v300_v46, %v301_v49 }
 0x127   :  { %2615 = vtanh.f32 %v302_v50 }
 0x134   :  { %v2616_v51 = vpop.eup %2615 }
 0x135   :  { %v304_v52 = vmul.f32 0.5, %v2616_v51 }
 0x137   :  { %v305_v53 = vadd.f32 0.5, %v304_v52 }
 0x139   :  { %v306_v54 = vsel %vm2894_vm4, %v2616_v51, %v305_v53 }
 0x13a   :  { %311 = vrot.lane.b32.xlu1 %v306_v54, %s2792_s0  ;;  %307 = vrot.lane.b32.xlu0 %v306_v54, %s2793_s5 }
 0x13e   :  { %309 = vrot.lane.b32.xlu0 %v306_v54, %s2794_s6 }
 0x1ac   :  { %v308_v55 = vpop.permute.xlu0 %307  ;;  %v312_v61 = vpop.permute.xlu1 %311 }
 0x1ad   :  { %v313_v57 = vmul.f32 0.0, %v308_v55 }
 0x1b0   :  { %v310_v56 = vpop.permute.xlu0 %309 }
 0x1b1   :  { %v314_v58 = vmul.f32 %v310_v56, %v306_v54 }
 0x1b3   :  { %v315_v59 = vadd.f32 %v314_v58, %v313_v57 }
 0x1b5   :  { %2617 = vtanh.f32 %v315_v59 }
 0x1c2   :  { %v2618_v60 = vpop.eup %2617 }
 0x1c3   :  { %v2905_v62 = vmul.f32 %v2618_v60, %v312_v61 }
 0x1c5   :  { %2531 = vmatmul.mubr.msk.f32.vlgmr.msra.gmra.mxu0 %vm226_vm5, %v2905_v62  ;;  %319 = vst.msk [vmem:[#allocation2] sm:$0x3] %vm318_vm6, %v2905_v62 }
 0x1c6   :  { %2545 = vmatpush3.msra.mxu0 %v2840_v6  ;;  %2552 = vmatprep.mubr.msk.f32.mxu0 %vm2791_vm0, %v2790_v0 }
 0x1c7   :  { %2546 = vmatprep.subr.mxu0 %v2790_v0 }
 0x1c8   :  { %2547 = vmatpush3.msra.mxu0 %v2845_v10 }
 0x1c9   :  { %2548 = vmatprep.subr.mxu0 %v2790_v0 }
 0x1ca   :  { %2549 = vmatpush3.msra.mxu0 %v2850_v12 }
 0x1cb   :  { %2550 = vmatprep.subr.mxu0 %v2790_v0 }
 0x1cc   :  { %2551 = vmatpush3.msra.mxu0 %v2854_v14 }
 0x1cd   :  { %2566 = vmatprep.subr.mxu0 %v2790_v0 }
 0x285   :  { %v394_v63 = vpop.f32.mrf.mxu0 }
 0x286   :  { %v399_v2 = vrot.slane %v394_v63, 6 }
 0x287   :  { %v2532_v3 = vpop.f32.mrf.mxu0 }
 0x288   :  { %v401_v4 = vadd.f32 %v399_v2, %v2889_v44 }
 0x28a   :  { %v402_v5 = vmul.f32 0.5, %v401_v4 }
 0x28c   :  { %v403_v7 = vsel %vm2894_vm4, %v401_v4, %v402_v5 }
 0x28d   :  { %2619 = vtanh.f32 %v403_v7 }
 0x29a   :  { %v2620_v8 = vpop.eup %2619 }
 0x29b   :  { %v405_v9 = vmul.f32 0.5, %v2620_v8 }
 0x29d   :  { %v406_v11 = vadd.f32 0.5, %v405_v9 }
 0x29f   :  { %v407_v13 = vsel %vm2894_vm4, %v2620_v8, %v406_v11 }
 0x2a0   :  { %v409_v15 = vrot.slane %v407_v13, 2 }
 0x2a2   :  { %411 = vrot.lane.b32.xlu0 %v409_v15, %s2793_s5  ;;  %413 = vrot.lane.b32.xlu1 %v409_v15, %s2794_s6 }
 0x2a6   :  { %415 = vrot.lane.b32.xlu1 %v409_v15, %s2792_s0 }
 0x314   :  { %v414_v16 = vpop.permute.xlu1 %413  ;;  %v412_v18 = vpop.permute.xlu0 %411 }
 0x315   :  { %v419_v17 = vrot.slane %v414_v16, 6  ;;  %v417_v20 = vmul.f32 %v412_v18, %v315_v59 }
 0x317   :  { %v421_v19 = vmul.f32 %v419_v17, %v407_v13 }
 0x318   :  { %v416_v24 = vpop.permute.xlu1 %415 }
 0x319   :  { %v423_v21 = vrot.slane %v421_v19, 2 }
 0x31b   :  { %v425_v22 = vadd.f32 %v423_v21, %v417_v20 }
 0x31d   :  { %2621 = vtanh.f32 %v425_v22 }
 0x32a   :  { %v2622_v23 = vpop.eup %2621 }
 0x32b   :  { %v2929_v25 = vmul.f32 %v2622_v23, %v416_v24 }
 0x32d   :  { %428 = vst.msk [vmem:[#allocation2 + $0x2] sm:$0x3] %vm318_vm6, %v2929_v25  ;;  %2542 = vmatmul.mubr.msk.f32.vlgmr.msra.gmra.mxu1 %vm226_vm5, %v2929_v25 }
 0x32e   :  { %2556 = vmatpush3.msra.mxu1 %v2840_v6  ;;  %2563 = vmatprep.mubr.msk.f32.mxu1 %vm2791_vm0, %v2790_v0 }
 0x32f   :  { %2557 = vmatprep.subr.mxu1 %v2790_v0 }
 0x330   :  { %2558 = vmatpush3.msra.mxu1 %v2845_v10 }
 0x331   :  { %2559 = vmatprep.subr.mxu1 %v2790_v0 }
 0x332   :  { %2560 = vmatpush3.msra.mxu1 %v2850_v12 }
 0x333   :  { %2561 = vmatprep.subr.mxu1 %v2790_v0 }
 0x334   :  { %2562 = vmatpush3.msra.mxu1 %v2854_v14 }
 0x335   :  { %2577 = vmatprep.subr.mxu1 %v2790_v0 }
 0x3ed   :  { %v502_v26 = vpop.f32.mrf.mxu1 }
 0x3ee   :  { %v507_v27 = vrot.slane %v502_v26, 4 }
 0x3ef   :  { %v2543_v28 = vpop.f32.mrf.mxu1 }
 0x3f0   :  { %v509_v29 = vadd.f32 %v507_v27, %v2889_v44 }
 0x3f2   :  { %v510_v30 = vmul.f32 0.5, %v509_v29 }
 0x3f4   :  { %v511_v31 = vsel %vm2894_vm4, %v509_v29, %v510_v30 }
 0x3f5   :  { %2623 = vtanh.f32 %v511_v31 }
 0x402   :  { %v2624_v32 = vpop.eup %2623 }
 0x403   :  { %v513_v33 = vmul.f32 0.5, %v2624_v32 }
 0x405   :  { %v514_v34 = vadd.f32 0.5, %v513_v33 }
 0x407   :  { %v515_v35 = vsel %vm2894_vm4, %v2624_v32, %v514_v34 }
 0x408   :  { %v517_v36 = vrot.slane %v515_v35, 4 }
 0x40a   :  { %519 = vrot.lane.b32.xlu1 %v517_v36, %s2793_s5  ;;  %521 = vrot.lane.b32.xlu0 %v517_v36, %s2794_s6 }
 0x40e   :  { %523 = vrot.lane.b32.xlu0 %v517_v36, %s2792_s0 }
 0x47c   :  { %v522_v37 = vpop.permute.xlu0 %521  ;;  %v520_v40 = vpop.permute.xlu1 %519 }
 0x47d   :  { %v527_v38 = vrot.slane %v522_v37, 4  ;;  %v525_v45 = vmul.f32 %v520_v40, %v425_v22 }
 0x47f   :  { %v529_v43 = vmul.f32 %v527_v38, %v515_v35 }
 0x480   :  { %v524_v50 = vpop.permute.xlu0 %523 }
 0x481   :  { %v531_v46 = vrot.slane %v529_v43, 4 }
 0x483   :  { %v533_v48 = vadd.f32 %v531_v46, %v525_v45 }
 0x485   :  { %2625 = vtanh.f32 %v533_v48 }
 0x492   :  { %v2626_v49 = vpop.eup %2625 }
 0x493   :  { %v2953_v51 = vmul.f32 %v2626_v49, %v524_v50 }
 0x495   :  { %536 = vst.msk [vmem:[#allocation2 + $0x4] sm:$0x3] %vm318_vm6, %v2953_v51  ;;  %2553 = vmatmul.mubr.msk.f32.vlgmr.msra.gmra.mxu0 %vm226_vm5, %v2953_v51 }
 0x496   :  { %2567 = vmatpush3.msra.mxu0 %v2840_v6  ;;  %2574 = vmatprep.mubr.msk.f32.mxu0 %vm2791_vm0, %v2790_v0 }
 0x497   :  { %2568 = vmatprep.subr.mxu0 %v2790_v0 }
 0x498   :  { %2569 = vmatpush3.msra.mxu0 %v2845_v10 }
 0x499   :  { %2570 = vmatprep.subr.mxu0 %v2790_v0 }
 0x49a   :  { %2571 = vmatpush3.msra.mxu0 %v2850_v12 }
 0x49b   :  { %2572 = vmatprep.subr.mxu0 %v2790_v0 }
 0x49c   :  { %2573 = vmatpush3.msra.mxu0 %v2854_v14 }
 0x49d   :  { %2588 = vmatprep.subr.mxu0 %v2790_v0 }
 0x555   :  { %v610_v52 = vpop.f32.mrf.mxu0 }
 0x556   :  { %v615_v53 = vrot.slane %v610_v52, 2 }
 0x557   :  { %v2554_v54 = vpop.f32.mrf.mxu0 }
 0x558   :  { %v617_v55 = vadd.f32 %v615_v53, %v2889_v44 }
 0x55a   :  { %v618_v56 = vmul.f32 0.5, %v617_v55 }
 0x55c   :  { %v619_v57 = vsel %vm2894_vm4, %v617_v55, %v618_v56 }
 0x55d   :  { %2627 = vtanh.f32 %v619_v57 }
 0x56a   :  { %v2628_v58 = vpop.eup %2627 }
 0x56b   :  { %v621_v59 = vmul.f32 0.5, %v2628_v58 }
 0x56d   :  { %v622_v60 = vadd.f32 0.5, %v621_v59 }
 0x56f   :  { %v623_v61 = vsel %vm2894_vm4, %v2628_v58, %v622_v60 }
 0x570   :  { %v625_v63 = vrot.slane %v623_v61, 6 }
 0x572   :  { %627 = vrot.lane.b32.xlu0 %v625_v63, %s2793_s5  ;;  %629 = vrot.lane.b32.xlu1 %v625_v63, %s2794_s6 }
 0x576   :  { %631 = vrot.lane.b32.xlu1 %v625_v63, %s2792_s0 }
 0x5e4   :  { %v630_v2 = vpop.permute.xlu1 %629  ;;  %v628_v3 = vpop.permute.xlu0 %627 }
 0x5e5   :  { %v635_v44 = vrot.slane %v630_v2, 2  ;;  %v633_v5 = vmul.f32 %v628_v3, %v533_v48 }
 0x5e7   :  { %v637_v4 = vmul.f32 %v635_v44, %v623_v61 }
 0x5e8   :  { %v632_v11 = vpop.permute.xlu1 %631 }
 0x5e9   :  { %v639_v7 = vrot.slane %v637_v4, 6 }
 0x5eb   :  { %v641_v8 = vadd.f32 %v639_v7, %v633_v5 }
 0x5ed   :  { %2629 = vtanh.f32 %v641_v8 }
 0x5fa   :  { %v2630_v9 = vpop.eup %2629 }
 0x5fb   :  { %v2977_v13 = vmul.f32 %v2630_v9, %v632_v11 }
 0x5fd   :  { %644 = vst.msk [vmem:[#allocation2 + $0x6] sm:$0x3] %vm318_vm6, %v2977_v13  ;;  %2564 = vmatmul.mubr.msk.f32.vlgmr.msra.gmra.mxu1 %vm226_vm5, %v2977_v13 }
 0x5fe   :  { %2578 = vmatpush3.msra.mxu1 %v2840_v6  ;;  %2585 = vmatprep.mubr.msk.f32.mxu1 %vm2791_vm0, %v2790_v0 }
 0x5ff   :  { %2579 = vmatprep.subr.mxu1 %v2790_v0 }
 0x600   :  { %2580 = vmatpush3.msra.mxu1 %v2845_v10 }
 0x601   :  { %2581 = vmatprep.subr.mxu1 %v2790_v0 }
 0x602   :  { %2582 = vmatpush3.msra.mxu1 %v2850_v12 }
 0x603   :  { %2583 = vmatprep.subr.mxu1 %v2790_v0 }
 0x604   :  { %2584 = vmatpush3.msra.mxu1 %v2854_v14 }
 0x6bd   :  { %v718_v15 = vpop.f32.mrf.mxu1 }
 0x6be   :  { %v722_v16 = vadd.f32 %v718_v15, %v2884_v41 }
 0x6bf   :  { %v2565_v17 = vpop.f32.mrf.mxu1 }
 0x6c0   :  { %v723_v18 = vmul.f32 0.5, %v722_v16 }
 0x6c2   :  { %v724_v19 = vsel %vm2894_vm4, %v722_v16, %v723_v18 }
 0x6c3   :  { %2631 = vtanh.f32 %v724_v19 }
 0x6d0   :  { %v2632_v20 = vpop.eup %2631 }
 0x6d1   :  { %v726_v21 = vmul.f32 0.5, %v2632_v20 }
 0x6d3   :  { %v727_v22 = vadd.f32 0.5, %v726_v21 }
 0x6d5   :  { %v728_v23 = vsel %vm2894_vm4, %v2632_v20, %v727_v22 }
 0x6d6   :  { %731 = vrot.lane.b32.xlu1 %v728_v23, %s2794_s6  ;;  %729 = vrot.lane.b32.xlu0 %v728_v23, %s2793_s5 }
 0x6da   :  { %733 = vrot.lane.b32.xlu0 %v728_v23, %s2792_s0 }
 0x748   :  { %v732_v24 = vpop.permute.xlu1 %731  ;;  %v730_v26 = vpop.permute.xlu0 %729 }
 0x749   :  { %v736_v27 = vmul.f32 %v732_v24, %v728_v23  ;;  %v735_v28 = vmul.f32 %v730_v26, %v641_v8 }
 0x74b   :  { %v737_v29 = vadd.f32 %v736_v27, %v735_v28 }
 0x74c   :  { %v734_v31 = vpop.permute.xlu0 %733 }
 0x74d   :  { %2633 = vtanh.f32 %v737_v29 }
 0x75a   :  { %v2634_v30 = vpop.eup %2633 }
 0x75b   :  { %v3000_v32 = vmul.f32 %v2634_v30, %v734_v31 }
 0x75d   :  { %2575 = vmatmul.mubr.msk.f32.vlgmr.msra.gmra.mxu0 %vm226_vm5, %v3000_v32 }
 0x75e   :  { %2589 = vmatpush3.msra.mxu0 %v2840_v6  ;;  %2596 = vmatprep.mubr.msk.f32.mxu0 %vm2791_vm0, %v2790_v0 }
 0x75f   :  { %2590 = vmatprep.subr.mxu0 %v2790_v0 }
 0x760   :  { %2591 = vmatpush3.msra.mxu0 %v2845_v10 }
 0x761   :  { %2592 = vmatprep.subr.mxu0 %v2790_v0 }
 0x762   :  { %2593 = vmatpush3.msra.mxu0 %v2850_v12 }
 0x763   :  { %2594 = vmatprep.subr.mxu0 %v2790_v0 }
 0x764   :  { %2595 = vmatpush3.msra.mxu0 %v2854_v14 }
 0x81d   :  { %v814_v33 = vpop.f32.mrf.mxu0 }
 0x81e   :  { %v819_v34 = vrot.slane %v814_v33, 6  ;;  %v3056_v33 = vld [vmem:[#allocation9 + $0xf8] sm:$0xff] }
 0x81f   :  { %v2576_v35 = vpop.f32.mrf.mxu0  ;;  %1185 = vmatprep.subr.mxu0 %v3056_v33 }
 0x820   :  { %v821_v6 = vadd.f32 %v819_v34, %v2884_v41  ;;  %v3059_v34 = vld [vmem:[#allocation9 + $0xf0] sm:$0xff]  ;;  %v108_v35 = vld [vmem:[#allocation9 + $0x68] sm:$0xff] }
 0x822   :  { %v822_v36 = vmul.f32 0.5, %v821_v6 }
 0x824   :  { %v823_v37 = vsel %vm2894_vm4, %v821_v6, %v822_v36  ;;  %v3061_v6 = vld [vmem:[#allocation9 + $0xe8] sm:$0xff]  ;;  %v107_v36 = vld [vmem:[#allocation9 + $0x60] sm:$0xff] }
 0x825   :  { %2635 = vtanh.f32 %v823_v37  ;;  %v3064_v37 = vld [vmem:[#allocation9 + $0xe0] sm:$0xff] }
 0x832   :  { %v2636_v38 = vpop.eup %2635 }
 0x833   :  { %v825_v10 = vmul.f32 0.5, %v2636_v38 }
 0x835   :  { %v826_v40 = vadd.f32 0.5, %v825_v10  ;;  %v3067_v10 = vld [vmem:[#allocation9 + $0xd8] sm:$0xff] }
 0x837   :  { %v827_v12 = vsel %vm2894_vm4, %v2636_v38, %v826_v40  ;;  %v106_v38 = vld [vmem:[#allocation9 + $0x58] sm:$0xff]  ;;  %v105_v40 = vld [vmem:[#allocation9 + $0x50] sm:$0xff] }
 0x838   :  { %v829_v43 = vrot.slane %v827_v12, 2 }
 0x83a   :  { %831 = vrot.lane.b32.xlu0 %v829_v43, %s2793_s5  ;;  %833 = vrot.lane.b32.xlu1 %v829_v43, %s2794_s6 }
 0x83e   :  { %835 = vrot.lane.b32.xlu1 %v829_v43, %s2792_s0  ;;  %v104_v43 = vld [vmem:[#allocation9 + $0x48] sm:$0xff] }
 0x8ac   :  { %v834_v14 = vpop.permute.xlu1 %833  ;;  %v832_v46 = vpop.permute.xlu0 %831 }
 0x8ad   :  { %v839_v45 = vrot.slane %v834_v14, 6  ;;  %v837_v49 = vmul.f32 %v832_v46, %v737_v29  ;;  %v3072_v14 = vld [vmem:[#allocation9 + $0xc8] sm:$0xff]  ;;  %v3075_v46 = vld [vmem:[#allocation9 + $0xc0] sm:$0xff] }
 0x8af   :  { %v841_v48 = vmul.f32 %v839_v45, %v827_v12  ;;  %v3069_v12 = vld [vmem:[#allocation9 + $0xd0] sm:$0xff]  ;;  %v103_v45 = vld [vmem:[#allocation9 + $0x40] sm:$0xff] }
 0x8b0   :  { %v836_v54 = vpop.permute.xlu1 %835 }
 0x8b1   :  { %v843_v50 = vrot.slane %v841_v48, 2 }
 0x8b3   :  { %v845_v52 = vadd.f32 %v843_v50, %v837_v49 }
 0x8b5   :  { %2637 = vtanh.f32 %v845_v52 }
 0x8c2   :  { %v2638_v53 = vpop.eup %2637 }
 0x8c3   :  { %v3021_v55 = vmul.f32 %v2638_v53, %v836_v54 }
 0x8c5   :  { %2586 = vmatmul.mubr.msk.f32.vlgmr.msra.gmra.mxu1 %vm226_vm5, %v3021_v55 }
 0x8c6   :  { %1154 = vmatprep.mubr.f32.mxu1 %v2790_v0 }
 0x985   :  { %v922_v56 = vpop.f32.mrf.mxu1 }
 0x986   :  { %v927_v57 = vrot.slane %v922_v56, 4 }
 0x987   :  { %v2587_v58 = vpop.f32.mrf.mxu1 }
 0x988   :  { %v929_v59 = vadd.f32 %v927_v57, %v2884_v41 }
 0x98a   :  { %v930_v60 = vmul.f32 0.5, %v929_v59 }
 0x98c   :  { %v931_v61 = vsel %vm2894_vm4, %v929_v59, %v930_v60 }
 0x98d   :  { %2639 = vtanh.f32 %v931_v61  ;;  %v102_v61 = vld [vmem:[#allocation9 + $0x38] sm:$0xff] }
 0x99a   :  { %v2640_v63 = vpop.eup %2639 }
 0x99b   :  { %v933_v2 = vmul.f32 0.5, %v2640_v63 }
 0x99d   :  { %v934_v44 = vadd.f32 0.5, %v933_v2  ;;  %v101_v2 = vld [vmem:[#allocation9 + $0x30] sm:$0xff] }
 0x99f   :  { %v935_v3 = vsel %vm2894_vm4, %v2640_v63, %v934_v44  ;;  %v3084_v63 = vld [vmem:[#allocation9 + $0xb8] sm:$0xff]  ;;  %v3087_v44 = vld [vmem:[#allocation9 + $0xb0] sm:$0xff] }
 0x9a0   :  { %v937_v4 = vrot.slane %v935_v3, 4 }
 0x9a2   :  { %939 = vrot.lane.b32.xlu1 %v937_v4, %s2793_s5  ;;  %941 = vrot.lane.b32.xlu0 %v937_v4, %s2794_s6 }
 0x9a6   :  { %943 = vrot.lane.b32.xlu0 %v937_v4, %s2792_s0  ;;  %v3090_v4 = vld [vmem:[#allocation9 + $0xa8] sm:$0xff] }
 0xa14   :  { %v942_v5 = vpop.permute.xlu0 %941  ;;  %v940_v8 = vpop.permute.xlu1 %939 }
 0xa15   :  { %v947_v7 = vrot.slane %v942_v5, 4  ;;  %v945_v11 = vmul.f32 %v940_v8, %v845_v52  ;;  %v99_v5 = vld [vmem:[#allocation9 + $0x20] sm:$0xff]  ;;  %v98_v8 = vld [vmem:[#allocation9 + $0x18] sm:$0xff] }
 0xa17   :  { %v949_v9 = vmul.f32 %v947_v7, %v935_v3  ;;  %v100_v3 = vld [vmem:[#allocation9 + $0x28] sm:$0xff]  ;;  %v3092_v7 = vld [vmem:[#allocation9 + $0xa0] sm:$0xff] }
 0xa18   :  { %v944_v18 = vpop.permute.xlu0 %943 }
 0xa19   :  { %v951_v15 = vrot.slane %v949_v9, 4  ;;  %v3095_v9 = vld [vmem:[#allocation9 + $0x98] sm:$0xff] }
 0xa1b   :  { %v3034_v16 = vadd.f32 %v951_v15, %v945_v11  ;;  %v97_v11 = vld [vmem:[#allocation9 + $0x10] sm:$0xff] }
 0xa1c   :  { %v3098_v15 = vld [vmem:[#allocation9 + $0x90] sm:$0xff] }
 0xa1d   :  { %2641 = vtanh.f32 %v3034_v16 }
 0xa2a   :  { %v2642_v17 = vpop.eup %2641 }
 0xa2b   :  { %v3037_v19 = vmul.f32 %v2642_v17, %v944_v18  ;;  %v3100_v17 = vld [vmem:[#allocation9 + $0x88] sm:$0xff]  ;;  %v95_v18 = vld [vmem:[#allocation9] sm:$0xff] }
 0xa2d   :  { %2597 = vmatmul.mubr.msk.f32.vlgmr.msra.gmra.mxu0 %vm226_vm5, %v3037_v19 }
 0xa2e   :  { %1233 = vmatprep.mubr.f32.mxu0 %v2790_v0  ;;  %1186 = vmatpush1.msra.mxu0 %v3059_v34 }
 0xa2f   :  { %1187 = vmatprep.subr.mxu0 %v3061_v6 }
 0xa30   :  { %1188 = vmatpush1.msra.mxu0 %v3064_v37 }
 0xa31   :  { %1189 = vmatprep.subr.mxu0 %v3067_v10 }
 0xa32   :  { %1190 = vmatpush1.msra.mxu0 %v3069_v12 }
 0xa33   :  { %1191 = vmatprep.subr.mxu0 %v3072_v14 }
 0xa34   :  { %1192 = vmatpush1.msra.mxu0 %v3075_v46 }
 0xa35   :  { %1193 = vmatprep.subr.mxu0 %v3084_v63 }
 0xa36   :  { %1194 = vmatpush1.msra.mxu0 %v3087_v44 }
 0xa37   :  { %1195 = vmatprep.subr.mxu0 %v3090_v4 }
 0xa38   :  { %1196 = vmatpush1.msra.mxu0 %v3092_v7 }
 0xa39   :  { %1197 = vmatprep.subr.mxu0 %v3095_v9 }
 0xa3a   :  { %1198 = vmatpush1.msra.mxu0 %v3098_v15 }
 0xa3b   :  { %1199 = vmatprep.subr.mxu0 %v3100_v17 }
 0xaed   :  { %v1030_v20 = vpop.f32.mrf.mxu0 }
 0xaee   :  { %v1035_v21 = vrot.slane %v1030_v20, 2  ;;  %v3103_v20 = vld [vmem:[#allocation9 + $0x80] sm:$0xff] }
 0xaef   :  { %v2598_v22 = vpop.f32.mrf.mxu0  ;;  %1200 = vmatpush1.msra.mxu0 %v3103_v20 }
 0xaf0   :  { %v1037_v23 = vadd.f32 %v1035_v21, %v2884_v41  ;;  %v110_v41 = vld [vmem:[#allocation9 + $0x78] sm:$0xff]  ;;  %1234 = vmatmul.mubr.f32.vlgmr.msra.gmra.mxu0 %v2790_v0  ;;  %1415 = vmatprep.subr.mxu0 %v3056_v33 }
 0xaf1   :  { %1106 = vmatprep.subr.mxu1 %v110_v41  ;;  %1463 = vmatprep.mubr.f32.mxu0 %v2790_v0 }
 0xaf2   :  { %v1038_v24 = vmul.f32 0.5, %v1037_v23  ;;  %1107 = vmatpush1.msra.mxu1 %v109_v47  ;;  %1416 = vmatpush1.msra.mxu0 %v3059_v34 }
 0xaf3   :  { %1108 = vmatprep.subr.mxu1 %v108_v35  ;;  %1417 = vmatprep.subr.mxu0 %v3061_v6 }
 0xaf4   :  { %v1039_v26 = vsel %vm2894_vm4, %v1037_v23, %v1038_v24  ;;  %1109 = vmatpush1.msra.mxu1 %v107_v36  ;;  %1418 = vmatpush1.msra.mxu0 %v3064_v37 }
 0xaf5   :  { %2643 = vtanh.f32 %v1039_v26  ;;  %1110 = vmatprep.subr.mxu1 %v106_v38  ;;  %1419 = vmatprep.subr.mxu0 %v3067_v10  ;;  %v3152_v26 = vshrl.u32 %v214_v39, 7  ;;  %v3164_v38 = vadd.s32 128, %v2887_v42 }
 0xaf6   :  { %1111 = vmatpush1.msra.mxu1 %v105_v40  ;;  %1420 = vmatpush1.msra.mxu0 %v3069_v12 }
 0xaf7   :  { %1112 = vmatprep.subr.mxu1 %v104_v43  ;;  %1421 = vmatprep.subr.mxu0 %v3072_v14  ;;  %vm223_vm9 = vcmp.lt.s32.totalorder %v3164_v38, 192 }
 0xaf8   :  { %1113 = vmatpush1.msra.mxu1 %v103_v45  ;;  %1422 = vmatpush1.msra.mxu0 %v3075_v46 }
 0xaf9   :  { %1114 = vmatprep.subr.mxu1 %v102_v61  ;;  %1423 = vmatprep.subr.mxu0 %v3084_v63 }
 0xafa   :  { %1115 = vmatpush1.msra.mxu1 %v101_v2  ;;  %1424 = vmatpush1.msra.mxu0 %v3087_v44 }
 0xafb   :  { %1116 = vmatprep.subr.mxu1 %v100_v3  ;;  %1425 = vmatprep.subr.mxu0 %v3090_v4 }
 0xafc   :  { %1117 = vmatpush1.msra.mxu1 %v99_v5  ;;  %1426 = vmatpush1.msra.mxu0 %v3092_v7 }
 0xafd   :  { %1118 = vmatprep.subr.mxu1 %v98_v8  ;;  %1427 = vmatprep.subr.mxu0 %v3095_v9 }
 0xafe   :  { %1119 = vmatpush1.msra.mxu1 %v97_v11  ;;  %1428 = vmatpush1.msra.mxu0 %v3098_v15 }
 0xaff   :  { %1429 = vmatprep.subr.mxu0 %v3100_v17 }
 0xb00   :  { %1430 = vmatpush1.msra.mxu0 %v3103_v20 }
 0xb01   :  { %1659 = vmatprep.subr.mxu0 %v3056_v33 }
 0xb02   :  { %v2644_v27 = vpop.eup %2643 }
 0xb03   :  { %v1041_v28 = vmul.f32 0.5, %v2644_v27 }
 0xb05   :  { %v1042_v29 = vadd.f32 0.5, %v1041_v28  ;;  %v128_v28 = vld [vmem:[#allocation9 + $0x100] ss:$8 sm:$0x3] }
 0xb07   :  { %v1043_v30 = vsel %vm2894_vm4, %v2644_v27, %v1042_v29  ;;  %v1075_v27 = vsub.s32 0, %v3152_v26  ;;  %v1079_v29 = vsub.s32 1, %v3152_v26 }
 0xb08   :  { %v1045_v31 = vrot.slane %v1043_v30, 6 }
 0xb0a   :  { %1047 = vrot.lane.b32.xlu0 %v1045_v31, %s2793_s5  ;;  %1049 = vrot.lane.b32.xlu1 %v1045_v31, %s2794_s6 }
 0xb0e   :  { %742 = vrot.lane.b32.xlu0 %v3000_v32, %s2792_s0  ;;  %1051 = vrot.lane.b32.xlu1 %v1045_v31, %s2792_s0  ;;  %v3158_v31 = vrot.slane %v128_v28, %v1079_v29 }
 0xb12   :  { %958 = vrot.lane.b32.xlu0 %v3037_v19, %s2792_s0  ;;  %850 = vrot.lane.b32.xlu1 %v3021_v55, %s2792_s0 }
 0xb7c   :  { %v1048_v48 = vpop.permute.xlu0 %1047  ;;  %v1050_v49 = vpop.permute.xlu1 %1049 }
 0xb7d   :  { %v1055_v50 = vrot.slane %v1050_v49, 2  ;;  %v1053_v56 = vmul.f32 %v1048_v48, %v3034_v16  ;;  %v96_v16 = vld [vmem:[#allocation9 + $0x8] sm:$0xff] }
 0xb7e   :  { %1120 = vmatprep.subr.mxu1 %v96_v16 }
 0xb7f   :  { %v1057_v52 = vmul.f32 %v1055_v50, %v1043_v30  ;;  %1121 = vmatpush1.msra.mxu1 %v95_v18  ;;  %v3156_v30 = vrot.slane %v128_v28, %v1075_v27 }
 0xb80   :  { %v743_v53 = vpop.permute.xlu0 %742  ;;  %v1052_v54 = vpop.permute.xlu1 %1051  ;;  %1287 = vmatprep.subr.mxu1 %v3056_v33 }
 0xb81   :  { %v1059_v57 = vrot.slane %v1057_v52, 6  ;;  %745 = vst.msk [vmem:[#allocation2 + $0x6] sm:$0x3] %vm324_vm7, %v743_v53 }
 0xb83   :  { %v1061_v58 = vadd.f32 %v1059_v57, %v1053_v56 }
 0xb84   :  { %v959_v59 = vpop.permute.xlu0 %958  ;;  %v851_v60 = vpop.permute.xlu1 %850 }
 0xb85   :  { %2645 = vtanh.f32 %v1061_v58  ;;  %961 = vst.msk [vmem:[#allocation2 + $0x2] sm:$0x3] %vm324_vm7, %v959_v59  ;;  %853 = vst.msk [vmem:[#allocation2 + $0x4] sm:$0x3] %vm324_vm7, %v851_v60 }
 0xb92   :  { %v2646_v21 = vpop.eup %2645 }
 0xb93   :  { %v3113_v22 = vmul.f32 %v2646_v21, %v1052_v54 }
 0xb95   :  { %1066 = vrot.lane.b32.xlu1 %v3113_v22, %s2792_s0 }
 0xbb0   :  { %v1235_v47 = vpop.f32.mrf.mxu0 }
 0xbb2   :  { %v1237_v43 = vpop.f32.mrf.mxu0 }
 0xc07   :  { %v1067_v23 = vpop.permute.xlu1 %1066 }
 0xc08   :  { %1069 = vst.msk [vmem:[#allocation2] sm:$0x3] %vm324_vm7, %v1067_v23 }
 0xc0f   :  { %v1070_v24 = vld [vmem:[#allocation2] sm:$0xff] }
 0xc10   :  { %2379 = vmatmul.mubr.msk.f32.vlgmr.msra.gmra.mxu1 %vm1083_vm8, %v1070_v24 }
 0xc11   :  { %1288 = vmatpush1.msra.mxu1 %v3059_v34  ;;  %1160 = vmatprep.mubr.f32.mxu1 %v2790_v0 }
 0xc12   :  { %1289 = vmatprep.subr.mxu1 %v3061_v6 }
 0xc13   :  { %1290 = vmatpush1.msra.mxu1 %v3064_v37 }
 0xc14   :  { %1291 = vmatprep.subr.mxu1 %v3067_v10 }
 0xc15   :  { %1292 = vmatpush1.msra.mxu1 %v3069_v12 }
 0xc16   :  { %1293 = vmatprep.subr.mxu1 %v3072_v14 }
 0xc17   :  { %1294 = vmatpush1.msra.mxu1 %v3075_v46 }
 0xc18   :  { %1295 = vmatprep.subr.mxu1 %v3084_v63 }
 0xc19   :  { %1296 = vmatpush1.msra.mxu1 %v3087_v44 }
 0xc1a   :  { %1297 = vmatprep.subr.mxu1 %v3090_v4 }
 0xc1b   :  { %1298 = vmatpush1.msra.mxu1 %v3092_v7 }
 0xc1c   :  { %1299 = vmatprep.subr.mxu1 %v3095_v9 }
 0xc1d   :  { %1300 = vmatpush1.msra.mxu1 %v3098_v15 }
 0xc1e   :  { %1301 = vmatprep.subr.mxu1 %v3100_v17 }
 0xc1f   :  { %1302 = vmatpush1.msra.mxu1 %v3103_v20 }
 0xc20   :  { %1532 = vmatprep.subr.mxu1 %v3056_v33 }
 0xcd0   :  { %v1156_v41 = vpop.f32.mrf.mxu1 }
 0xcd1   :  { %v3161_v35 = vadd.f32 %v1156_v41, %v3156_v30 }
 0xcd2   :  { %v1158_v36 = vpop.f32.mrf.mxu1 }
 0xcd3   :  { %v1240_v39 = vadd.f32 %v1235_v47, %v3161_v35  ;;  %v3168_v40 = vadd.f32 %v1158_v36, %v3158_v31 }
 0xcd5   :  { %v1242_v45 = vmul.f32 0.5, %v1240_v39  ;;  %v1241_v48 = vadd.f32 %v1237_v43, %v3168_v40 }
 0xcd7   :  { %2647 = vtanh.f32 %v1242_v45  ;;  %v1243_v49 = vmul.f32 0.5, %v1241_v48 }
 0xcd9   :  { %v1245_v50 = vsel %vm223_vm9, %v1241_v48, %v1243_v49 }
 0xcda   :  { %2649 = vtanh.f32 %v1245_v50 }
 0xce4   :  { %v2648_v52 = vpop.eup %2647 }
 0xce5   :  { %v1248_v53 = vmul.f32 0.5, %v2648_v52 }
 0xce7   :  { %v2650_v54 = vpop.eup %2649  ;;  %v1250_v56 = vadd.f32 0.5, %v1248_v53 }
 0xce8   :  { %v1249_v57 = vmul.f32 0.5, %v2650_v54 }
 0xce9   :  { %1254 = vrot.lane.b32.xlu0 %v1250_v56, %s2794_s6 }
 0xcea   :  { %v1251_v58 = vadd.f32 0.5, %v1249_v57 }
 0xcec   :  { %v1253_v59 = vsel %vm223_vm9, %v2650_v54, %v1251_v58 }
 0xced   :  { %1256 = vrot.lane.b32.xlu1 %v1253_v59, %s2794_s6  ;;  %v1262_v60 = vmul.f32 %v1253_v59, %v1250_v56  ;;  %321 = vrot.lane.b32.xlu0 %v2905_v62, %s2792_s0 }
 0xcf1   :  { %430 = vrot.lane.b32.xlu1 %v2929_v25, %s2792_s0  ;;  %538 = vrot.lane.b32.xlu0 %v2953_v51, %s2792_s0 }
 0xcf5   :  { %646 = vrot.lane.b32.xlu1 %v2977_v13, %s2792_s0 }
 0xd5b   :  { %v1255_v61 = vpop.permute.xlu0 %1254 }
 0xd5f   :  { %v1257_v2 = vpop.permute.xlu1 %1256  ;;  %v322_v3 = vpop.permute.xlu0 %321 }
 0xd60   :  { %v1259_v5 = vsel %vm1258_vm10, %v1255_v61, %v1257_v2  ;;  %325 = vst.msk [vmem:[#allocation2 + $0xe] sm:$0x3] %vm324_vm7, %v322_v3  ;;  %v1260_v18 = vsel %vm1258_vm10, %v1257_v2, %v1255_v61 }
 0xd61   :  { %v1261_v62 = vmul.f32 0.0, %v1259_v5  ;;  %1064 = vst.msk [vmem:[#allocation2 + $0xe] sm:$0x3] %vm318_vm6, %v3113_v22 }
 0xd63   :  { %v3192_v25 = vadd.f32 %v1262_v60, %v1261_v62  ;;  %v431_v51 = vpop.permute.xlu1 %430  ;;  %v539_v8 = vpop.permute.xlu0 %538 }
 0xd64   :  { %433 = vst.msk [vmem:[#allocation2 + $0xc] sm:$0x3] %vm324_vm7, %v431_v51  ;;  %541 = vst.msk [vmem:[#allocation2 + $0xa] sm:$0x3] %vm324_vm7, %v539_v8 }
 0xd65   :  { %2651 = vtanh.f32 %v3192_v25  ;;  %956 = vst.msk [vmem:[#allocation2 + $0xc] sm:$0x3] %vm318_vm6, %v3037_v19  ;;  %848 = vst.msk [vmem:[#allocation2 + $0xa] sm:$0x3] %vm318_vm6, %v3021_v55 }
 0xd67   :  { %v647_v13 = vpop.permute.xlu1 %646 }
 0xd68   :  { %649 = vst.msk [vmem:[#allocation2 + $0x8] sm:$0x3] %vm324_vm7, %v647_v13 }
 0xd69   :  { %740 = vst.msk [vmem:[#allocation2 + $0x8] sm:$0x3] %vm318_vm6, %v3000_v32 }
 0xd70   :  { %v1071_v11 = vld [vmem:[#allocation2 + $0x8] sm:$0xff] }
 0xd71   :  { %2380 = vmatmul.mubr.msk.f32.gmra.mxu1 %vm1083_vm8, %v1071_v11 }
 0xd72   :  { %v2652_v16 = vpop.eup %2651  ;;  %1335 = vmatprep.mubr.f32.mxu1 %v2790_v0 }
 0xd73   :  { %v1265_v19 = vmul.f32 %v2652_v16, %v1260_v18 }
 0xd75   :  { %1267 = vst.msk [vmem:[#allocation3] sm:$0x3] %vm1266_vm11, %v1265_v19  ;;  %2381 = vmatmul.mubr.msk.f32.vlgmr.msra.gmra.mxu1 %vm1083_vm8, %v1265_v19 }
 0xd76   :  { %1533 = vmatpush1.msra.mxu1 %v3059_v34  ;;  %1580 = vmatprep.mubr.f32.mxu1 %v2790_v0 }
 0xd77   :  { %1534 = vmatprep.subr.mxu1 %v3061_v6 }
 0xd78   :  { %1535 = vmatpush1.msra.mxu1 %v3064_v37 }
 0xd79   :  { %1536 = vmatprep.subr.mxu1 %v3067_v10 }
 0xd7a   :  { %1537 = vmatpush1.msra.mxu1 %v3069_v12 }
 0xd7b   :  { %1538 = vmatprep.subr.mxu1 %v3072_v14 }
 0xd7c   :  { %1539 = vmatpush1.msra.mxu1 %v3075_v46 }
 0xd7d   :  { %1540 = vmatprep.subr.mxu1 %v3084_v63 }
 0xd7e   :  { %1541 = vmatpush1.msra.mxu1 %v3087_v44 }
 0xd7f   :  { %1542 = vmatprep.subr.mxu1 %v3090_v4 }
 0xd80   :  { %1543 = vmatpush1.msra.mxu1 %v3092_v7 }
 0xd81   :  { %1544 = vmatprep.subr.mxu1 %v3095_v9 }
 0xd82   :  { %1545 = vmatpush1.msra.mxu1 %v3098_v15 }
 0xd83   :  { %1546 = vmatprep.subr.mxu1 %v3100_v17 }
 0xd84   :  { %1547 = vmatpush1.msra.mxu1 %v3103_v20 }
 0xd85   :  { %1759 = vmatprep.subr.mxu1 %v3056_v33 }
 0xe31   :  { %v3227_v32 = vpop.f32.mrf.mxu1 }
 0xe33   :  { %v3229_v55 = vpop.f32.mrf.mxu1 }
 0xe35   :  { %v1337_v21 = vpop.f32.mrf.mxu1 }
 0xe36   :  { %v1344_v22 = vrot.slane %v1337_v21, 6 }
 0xe37   :  { %v1339_v23 = vpop.f32.mrf.mxu1 }
 0xe38   :  { %v1348_v24 = vadd.f32 %v1344_v22, %v3161_v35  ;;  %v1345_v27 = vrot.slane %v1339_v23, 6 }
 0xe3a   :  { %v1350_v28 = vmul.f32 0.5, %v1348_v24  ;;  %v1349_v29 = vadd.f32 %v1345_v27, %v3168_v40 }
 0xe3c   :  { %2653 = vtanh.f32 %v1350_v28  ;;  %v1351_v41 = vmul.f32 0.5, %v1349_v29 }
 0xe3e   :  { %v1353_v47 = vsel %vm223_vm9, %v1349_v29, %v1351_v41 }
 0xe3f   :  { %2655 = vtanh.f32 %v1353_v47 }
 0xe49   :  { %v2654_v36 = vpop.eup %2653 }
 0xe4a   :  { %v1356_v39 = vmul.f32 0.5, %v2654_v36 }
 0xe4c   :  { %v2656_v43 = vpop.eup %2655  ;;  %v1358_v45 = vadd.f32 0.5, %v1356_v39 }
 0xe4d   :  { %v1357_v48 = vmul.f32 0.5, %v2656_v43 }
 0xe4e   :  { %v1364_v49 = vrot.slane %v1358_v45, 2 }
 0xe4f   :  { %v1359_v50 = vadd.f32 0.5, %v1357_v48 }
 0xe50   :  { %1368 = vrot.lane.b32.xlu0 %v1364_v49, %s2794_s6 }
 0xe51   :  { %v1361_v52 = vsel %vm223_vm9, %v2656_v43, %v1359_v50 }
 0xe52   :  { %v1365_v53 = vrot.slane %v1361_v52, 2 }
 0xe54   :  { %1370 = vrot.lane.b32.xlu1 %v1365_v53, %s2794_s6  ;;  %v1375_v54 = vrot.slane %v1365_v53, 6 }
 0xe56   :  { %v1377_v56 = vmul.f32 %v1375_v54, %v1358_v45 }
 0xe58   :  { %v1379_v61 = vrot.slane %v1377_v56, 2 }
 0xec2   :  { %v1369_v57 = vpop.permute.xlu0 %1368 }
 0xec6   :  { %v1371_v58 = vpop.permute.xlu1 %1370 }
 0xec7   :  { %v1372_v59 = vsel %vm1258_vm10, %v1369_v57, %v1371_v58  ;;  %v1373_v5 = vsel %vm1258_vm10, %v1371_v58, %v1369_v57 }
 0xec8   :  { %v1374_v60 = vmul.f32 %v1372_v59, %v3192_v25 }
 0xeca   :  { %v1381_v2 = vadd.f32 %v1379_v61, %v1374_v60 }
 0xecc   :  { %2657 = vtanh.f32 %v1381_v2 }
 0xed9   :  { %v2658_v3 = vpop.eup %2657 }
 0xeda   :  { %v3244_v62 = vmul.f32 %v2658_v3, %v1373_v5 }
 0xedc   :  { %2382 = vmatmul.mubr.msk.f32.vlgmr.msra.gmra.mxu0 %vm1083_vm8, %v3244_v62 }
 0xedd   :  { %1660 = vmatpush1.msra.mxu0 %v3059_v34  ;;  %1707 = vmatprep.mubr.f32.mxu0 %v2790_v0 }
 0xede   :  { %1661 = vmatprep.subr.mxu0 %v3061_v6 }
 0xedf   :  { %1662 = vmatpush1.msra.mxu0 %v3064_v37 }
 0xee0   :  { %1663 = vmatprep.subr.mxu0 %v3067_v10 }
 0xee1   :  { %1664 = vmatpush1.msra.mxu0 %v3069_v12 }
 0xee2   :  { %1665 = vmatprep.subr.mxu0 %v3072_v14 }
 0xee3   :  { %1666 = vmatpush1.msra.mxu0 %v3075_v46 }
 0xee4   :  { %1667 = vmatprep.subr.mxu0 %v3084_v63 }
 0xee5   :  { %1668 = vmatpush1.msra.mxu0 %v3087_v44 }
 0xee6   :  { %1669 = vmatprep.subr.mxu0 %v3090_v4 }
 0xee7   :  { %1670 = vmatpush1.msra.mxu0 %v3092_v7 }
 0xee8   :  { %1671 = vmatprep.subr.mxu0 %v3095_v9 }
 0xee9   :  { %1672 = vmatpush1.msra.mxu0 %v3098_v15 }
 0xeea   :  { %1673 = vmatprep.subr.mxu0 %v3100_v17 }
 0xeeb   :  { %1674 = vmatpush1.msra.mxu0 %v3103_v20 }
 0xeec   :  { %1886 = vmatprep.subr.mxu0 %v3056_v33 }
 0xf9c   :  { %v1465_v25 = vpop.f32.mrf.mxu0 }
 0xf9d   :  { %v1472_v51 = vrot.slane %v1465_v25, 4 }
 0xf9e   :  { %v1467_v8 = vpop.f32.mrf.mxu0 }
 0xf9f   :  { %v1476_v13 = vadd.f32 %v1472_v51, %v3161_v35  ;;  %v1473_v11 = vrot.slane %v1467_v8, 4 }
 0xfa1   :  { %v1478_v16 = vmul.f32 0.5, %v1476_v13  ;;  %v1477_v18 = vadd.f32 %v1473_v11, %v3168_v40 }
 0xfa3   :  { %2659 = vtanh.f32 %v1478_v16  ;;  %v1479_v19 = vmul.f32 0.5, %v1477_v18 }
 0xfa5   :  { %v1481_v21 = vsel %vm223_vm9, %v1477_v18, %v1479_v19 }
 0xfa6   :  { %2661 = vtanh.f32 %v1481_v21 }
 0xfb0   :  { %v2660_v22 = vpop.eup %2659 }
 0xfb1   :  { %v1484_v23 = vmul.f32 0.5, %v2660_v22 }
 0xfb3   :  { %v2662_v24 = vpop.eup %2661  ;;  %v1486_v27 = vadd.f32 0.5, %v1484_v23 }
 0xfb4   :  { %v1485_v28 = vmul.f32 0.5, %v2662_v24 }
 0xfb5   :  { %v1492_v29 = vrot.slane %v1486_v27, 4 }
 0xfb6   :  { %v1487_v41 = vadd.f32 0.5, %v1485_v28 }
 0xfb7   :  { %1496 = vrot.lane.b32.xlu0 %v1492_v29, %s2794_s6 }
 0xfb8   :  { %v1489_v47 = vsel %vm223_vm9, %v2662_v24, %v1487_v41 }
 0xfb9   :  { %v1493_v36 = vrot.slane %v1489_v47, 4 }
 0xfbb   :  { %1498 = vrot.lane.b32.xlu1 %v1493_v36, %s2794_s6  ;;  %v1503_v39 = vrot.slane %v1493_v36, 4 }
 0xfbd   :  { %v1505_v43 = vmul.f32 %v1503_v39, %v1486_v27 }
 0xfbf   :  { %v1507_v52 = vrot.slane %v1505_v43, 4  ;;  %v3330_v43 = vadd.f32 %v3227_v32, %v3156_v30 }
0x1029   :  { %v1497_v45 = vpop.permute.xlu0 %1496 }
0x102d   :  { %v1499_v48 = vpop.permute.xlu1 %1498 }
0x102e   :  { %v1500_v49 = vsel %vm1258_vm10, %v1497_v45, %v1499_v48  ;;  %v1501_v56 = vsel %vm1258_vm10, %v1499_v48, %v1497_v45  ;;  %v3334_v48 = vadd.f32 %v3229_v55, %v3158_v31 }
0x102f   :  { %v1502_v50 = vmul.f32 %v1500_v49, %v1381_v2 }
0x1031   :  { %v1509_v53 = vadd.f32 %v1507_v52, %v1502_v50 }
0x1033   :  { %2663 = vtanh.f32 %v1509_v53 }
0x1040   :  { %v2664_v54 = vpop.eup %2663 }
0x1041   :  { %v1511_v57 = vmul.f32 %v2664_v54, %v1501_v56 }
0x1043   :  { %1512 = vst.msk [vmem:[#allocation3 + $0x2] sm:$0x3] %vm1266_vm11, %v1511_v57  ;;  %2383 = vmatmul.mubr.msk.f32.vlgmr.msra.gmra.mxu1 %vm1083_vm8, %v1511_v57 }
0x1044   :  { %1760 = vmatpush1.msra.mxu1 %v3059_v34  ;;  %1807 = vmatprep.mubr.f32.mxu1 %v2790_v0 }
0x1045   :  { %1761 = vmatprep.subr.mxu1 %v3061_v6 }
0x1046   :  { %1762 = vmatpush1.msra.mxu1 %v3064_v37 }
0x1047   :  { %1763 = vmatprep.subr.mxu1 %v3067_v10 }
0x1048   :  { %1764 = vmatpush1.msra.mxu1 %v3069_v12 }
0x1049   :  { %1765 = vmatprep.subr.mxu1 %v3072_v14 }
0x104a   :  { %1766 = vmatpush1.msra.mxu1 %v3075_v46 }
0x104b   :  { %1767 = vmatprep.subr.mxu1 %v3084_v63 }
0x104c   :  { %1768 = vmatpush1.msra.mxu1 %v3087_v44 }
0x104d   :  { %1769 = vmatprep.subr.mxu1 %v3090_v4 }
0x104e   :  { %1770 = vmatpush1.msra.mxu1 %v3092_v7 }
0x104f   :  { %1771 = vmatprep.subr.mxu1 %v3095_v9 }
0x1050   :  { %1772 = vmatpush1.msra.mxu1 %v3098_v15 }
0x1051   :  { %1773 = vmatprep.subr.mxu1 %v3100_v17 }
0x1052   :  { %1774 = vmatpush1.msra.mxu1 %v3103_v20 }
0x1053   :  { %2003 = vmatprep.subr.mxu1 %v3056_v33 }
0x1103   :  { %v1582_v58 = vpop.f32.mrf.mxu1 }
0x1104   :  { %v1589_v59 = vrot.slane %v1582_v58, 2 }
0x1105   :  { %v1584_v60 = vpop.f32.mrf.mxu1 }
0x1106   :  { %v1593_v61 = vadd.f32 %v1589_v59, %v3161_v35  ;;  %v1590_v2 = vrot.slane %v1584_v60, 2 }
0x1108   :  { %v1595_v3 = vmul.f32 0.5, %v1593_v61  ;;  %v1594_v5 = vadd.f32 %v1590_v2, %v3168_v40 }
0x110a   :  { %2665 = vtanh.f32 %v1595_v3  ;;  %v1596_v25 = vmul.f32 0.5, %v1594_v5 }
0x110c   :  { %v1598_v51 = vsel %vm223_vm9, %v1594_v5, %v1596_v25 }
0x110d   :  { %2667 = vtanh.f32 %v1598_v51 }
0x1117   :  { %v2666_v8 = vpop.eup %2665 }
0x1118   :  { %v1601_v13 = vmul.f32 0.5, %v2666_v8 }
0x111a   :  { %v2668_v11 = vpop.eup %2667  ;;  %v1603_v16 = vadd.f32 0.5, %v1601_v13 }
0x111b   :  { %v1602_v33 = vmul.f32 0.5, %v2668_v11 }
0x111c   :  { %v1609_v18 = vrot.slane %v1603_v16, 6 }
0x111d   :  { %v1604_v19 = vadd.f32 0.5, %v1602_v33 }
0x111e   :  { %1613 = vrot.lane.b32.xlu0 %v1609_v18, %s2794_s6 }
0x111f   :  { %v1606_v35 = vsel %vm223_vm9, %v2668_v11, %v1604_v19 }
0x1120   :  { %v1610_v21 = vrot.slane %v1606_v35, 6 }
0x1122   :  { %1615 = vrot.lane.b32.xlu1 %v1610_v21, %s2794_s6  ;;  %v1620_v40 = vrot.slane %v1610_v21, 2 }
0x1124   :  { %v1622_v22 = vmul.f32 %v1620_v40, %v1603_v16 }
0x1126   :  { %v1624_v29 = vrot.slane %v1622_v22, 6 }
0x1190   :  { %v1614_v23 = vpop.permute.xlu0 %1613 }
0x1194   :  { %v1616_v24 = vpop.permute.xlu1 %1615 }
0x1195   :  { %v1617_v27 = vsel %vm1258_vm10, %v1614_v23, %v1616_v24  ;;  %v1618_v36 = vsel %vm1258_vm10, %v1616_v24, %v1614_v23 }
0x1196   :  { %v1619_v28 = vmul.f32 %v1617_v27, %v1509_v53 }
0x1198   :  { %v1626_v41 = vadd.f32 %v1624_v29, %v1619_v28 }
0x119a   :  { %2669 = vtanh.f32 %v1626_v41 }
0x11a7   :  { %v2670_v47 = vpop.eup %2669 }
0x11a8   :  { %v3308_v39 = vmul.f32 %v2670_v47, %v1618_v36 }
0x11aa   :  { %2384 = vmatmul.mubr.msk.f32.vlgmr.msra.gmra.mxu0 %vm1083_vm8, %v3308_v39 }
0x11ab   :  { %1887 = vmatpush1.msra.mxu0 %v3059_v34  ;;  %1934 = vmatprep.mubr.f32.mxu0 %v2790_v0 }
0x11ac   :  { %1888 = vmatprep.subr.mxu0 %v3061_v6 }
0x11ad   :  { %1889 = vmatpush1.msra.mxu0 %v3064_v37 }
0x11ae   :  { %1890 = vmatprep.subr.mxu0 %v3067_v10 }
0x11af   :  { %1891 = vmatpush1.msra.mxu0 %v3069_v12 }
0x11b0   :  { %1892 = vmatprep.subr.mxu0 %v3072_v14 }
0x11b1   :  { %1893 = vmatpush1.msra.mxu0 %v3075_v46 }
0x11b2   :  { %1894 = vmatprep.subr.mxu0 %v3084_v63 }
0x11b3   :  { %1895 = vmatpush1.msra.mxu0 %v3087_v44 }
0x11b4   :  { %1896 = vmatprep.subr.mxu0 %v3090_v4 }
0x11b5   :  { %1897 = vmatpush1.msra.mxu0 %v3092_v7 }
0x11b6   :  { %1898 = vmatprep.subr.mxu0 %v3095_v9 }
0x11b7   :  { %1899 = vmatpush1.msra.mxu0 %v3098_v15 }
0x11b8   :  { %1900 = vmatprep.subr.mxu0 %v3100_v17 }
0x11b9   :  { %1901 = vmatpush1.msra.mxu0 %v3103_v20 }
0x126a   :  { %v1709_v45 = vpop.f32.mrf.mxu0 }
0x126b   :  { %v1714_v49 = vadd.f32 %v1709_v45, %v3330_v43 }
0x126c   :  { %v1711_v50 = vpop.f32.mrf.mxu0 }
0x126d   :  { %v1716_v52 = vmul.f32 0.5, %v1714_v49  ;;  %v1715_v53 = vadd.f32 %v1711_v50, %v3334_v48 }
0x126f   :  { %2671 = vtanh.f32 %v1716_v52  ;;  %v1717_v54 = vmul.f32 0.5, %v1715_v53 }
0x1271   :  { %v1719_v56 = vsel %vm223_vm9, %v1715_v53, %v1717_v54 }
0x1272   :  { %2673 = vtanh.f32 %v1719_v56 }
0x127c   :  { %v2672_v57 = vpop.eup %2671 }
0x127d   :  { %v1722_v30 = vmul.f32 0.5, %v2672_v57 }
0x127f   :  { %v2674_v32 = vpop.eup %2673  ;;  %v1724_v58 = vadd.f32 0.5, %v1722_v30 }
0x1280   :  { %v1723_v59 = vmul.f32 0.5, %v2674_v32 }
0x1281   :  { %1728 = vrot.lane.b32.xlu0 %v1724_v58, %s2794_s6 }
0x1282   :  { %v1725_v31 = vadd.f32 0.5, %v1723_v59 }
0x1284   :  { %v1727_v55 = vsel %vm223_vm9, %v2674_v32, %v1725_v31 }
0x1285   :  { %1730 = vrot.lane.b32.xlu1 %v1727_v55, %s2794_s6  ;;  %v1735_v60 = vmul.f32 %v1727_v55, %v1724_v58 }
0x12f3   :  { %v1729_v61 = vpop.permute.xlu0 %1728 }
0x12f7   :  { %v1731_v2 = vpop.permute.xlu1 %1730 }
0x12f8   :  { %v1732_v3 = vsel %vm1258_vm10, %v1729_v61, %v1731_v2  ;;  %v1733_v8 = vsel %vm1258_vm10, %v1731_v2, %v1729_v61 }
0x12f9   :  { %v1734_v5 = vmul.f32 %v1732_v3, %v1626_v41 }
0x12fb   :  { %v1736_v25 = vadd.f32 %v1735_v60, %v1734_v5 }
0x12fd   :  { %2675 = vtanh.f32 %v1736_v25 }
0x130a   :  { %v2676_v51 = vpop.eup %2675 }
0x130b   :  { %v1738_v13 = vmul.f32 %v2676_v51, %v1733_v8 }
0x130d   :  { %1739 = vst.msk [vmem:[#allocation3 + $0x4] sm:$0x3] %vm1266_vm11, %v1738_v13  ;;  %2385 = vmatmul.mubr.msk.f32.vlgmr.msra.gmra.mxu1 %vm1083_vm8, %v1738_v13 }
0x130e   :  { %2004 = vmatpush1.msra.mxu1 %v3059_v34  ;;  %2051 = vmatprep.mubr.f32.mxu1 %v2790_v0 }
0x130f   :  { %2005 = vmatprep.subr.mxu1 %v3061_v6 }
0x1310   :  { %2006 = vmatpush1.msra.mxu1 %v3064_v37 }
0x1311   :  { %2007 = vmatprep.subr.mxu1 %v3067_v10 }
0x1312   :  { %2008 = vmatpush1.msra.mxu1 %v3069_v12 }
0x1313   :  { %2009 = vmatprep.subr.mxu1 %v3072_v14 }
0x1314   :  { %2010 = vmatpush1.msra.mxu1 %v3075_v46 }
0x1315   :  { %2011 = vmatprep.subr.mxu1 %v3084_v63 }
0x1316   :  { %2012 = vmatpush1.msra.mxu1 %v3087_v44 }
0x1317   :  { %2013 = vmatprep.subr.mxu1 %v3090_v4 }
0x1318   :  { %2014 = vmatpush1.msra.mxu1 %v3092_v7 }
0x1319   :  { %2015 = vmatprep.subr.mxu1 %v3095_v9 }
0x131a   :  { %2016 = vmatpush1.msra.mxu1 %v3098_v15 }
0x131b   :  { %2017 = vmatprep.subr.mxu1 %v3100_v17 }
0x131c   :  { %2018 = vmatpush1.msra.mxu1 %v3103_v20 }
0x13cd   :  { %v1809_v0 = vpop.f32.mrf.mxu1 }
0x13ce   :  { %v1816_v34 = vrot.slane %v1809_v0, 6 }
0x13cf   :  { %v1811_v6 = vpop.f32.mrf.mxu1 }
0x13d0   :  { %v1820_v37 = vadd.f32 %v1816_v34, %v3330_v43  ;;  %v1817_v10 = vrot.slane %v1811_v6, 6 }
0x13d2   :  { %v1822_v12 = vmul.f32 0.5, %v1820_v37  ;;  %v1821_v14 = vadd.f32 %v1817_v10, %v3334_v48 }
0x13d4   :  { %2677 = vtanh.f32 %v1822_v12  ;;  %v1823_v46 = vmul.f32 0.5, %v1821_v14 }
0x13d6   :  { %v1825_v63 = vsel %vm223_vm9, %v1821_v14, %v1823_v46 }
0x13d7   :  { %2679 = vtanh.f32 %v1825_v63 }
0x13e1   :  { %v2678_v44 = vpop.eup %2677 }
0x13e2   :  { %v1828_v4 = vmul.f32 0.5, %v2678_v44 }
0x13e4   :  { %v2680_v7 = vpop.eup %2679  ;;  %v1830_v9 = vadd.f32 0.5, %v1828_v4 }
0x13e5   :  { %v1829_v15 = vmul.f32 0.5, %v2680_v7 }
0x13e6   :  { %v1836_v17 = vrot.slane %v1830_v9, 2 }
0x13e7   :  { %v1831_v20 = vadd.f32 0.5, %v1829_v15 }
0x13e8   :  { %1840 = vrot.lane.b32.xlu0 %v1836_v17, %s2794_s6 }
0x13e9   :  { %v1833_v11 = vsel %vm223_vm9, %v2680_v7, %v1831_v20  ;;  %v2795_v7 = vmov 1983009808  }
0x13ea   :  { %v1837_v16 = vrot.slane %v1833_v11, 2 }
0x13ec   :  { %1842 = vrot.lane.b32.xlu1 %v1837_v16, %s2794_s6  ;;  %v1847_v33 = vrot.slane %v1837_v16, 6 }
0x13ee   :  { %v1849_v18 = vmul.f32 %v1847_v33, %v1830_v9  ;;  %v1386_v9 = vunpack.c.l.s4 %v2795_v7 }
0x13f0   :  { %v1851_v22 = vrot.slane %v1849_v18, 2  ;;  %v1387_v20 = vunpack.c.0.s8 %v1386_v9 }
0x145a   :  { %v1841_v19 = vpop.permute.xlu0 %1840 }
0x145e   :  { %v1843_v35 = vpop.permute.xlu1 %1842 }
0x145f   :  { %v1844_v21 = vsel %vm1258_vm10, %v1841_v19, %v1843_v35  ;;  %v1845_v27 = vsel %vm1258_vm10, %v1843_v35, %v1841_v19 }
0x1460   :  { %v1846_v40 = vmul.f32 %v1844_v21, %v1736_v25 }
0x1462   :  { %v1853_v23 = vadd.f32 %v1851_v22, %v1846_v40 }
0x1464   :  { %2681 = vtanh.f32 %v1853_v23 }
0x1471   :  { %v2682_v24 = vpop.eup %2681 }
0x1472   :  { %v3378_v28 = vmul.f32 %v2682_v24, %v1845_v27 }
0x1474   :  { %2386 = vmatmul.mubr.msk.f32.vlgmr.msra.gmra.mxu0 %vm1083_vm8, %v3378_v28 }
0x1534   :  { %v1936_v29 = vpop.f32.mrf.mxu0 }
0x1535   :  { %v1943_v41 = vrot.slane %v1936_v29, 4 }
0x1536   :  { %v1938_v47 = vpop.f32.mrf.mxu0 }
0x1537   :  { %v1947_v36 = vadd.f32 %v1943_v41, %v3330_v43  ;;  %v1944_v45 = vrot.slane %v1938_v47, 4 }
0x1539   :  { %v1949_v49 = vmul.f32 0.5, %v1947_v36  ;;  %v1948_v50 = vadd.f32 %v1944_v45, %v3334_v48 }
0x153b   :  { %2683 = vtanh.f32 %v1949_v49  ;;  %v1950_v52 = vmul.f32 0.5, %v1948_v50 }
0x153d   :  { %v1952_v53 = vsel %vm223_vm9, %v1948_v50, %v1950_v52 }
0x153e   :  { %2685 = vtanh.f32 %v1952_v53 }
0x1548   :  { %v2684_v54 = vpop.eup %2683 }
0x1549   :  { %v1955_v56 = vmul.f32 0.5, %v2684_v54 }
0x154b   :  { %v2686_v57 = vpop.eup %2685  ;;  %v1957_v30 = vadd.f32 0.5, %v1955_v56 }
0x154c   :  { %v1956_v32 = vmul.f32 0.5, %v2686_v57 }
0x154d   :  { %v1963_v58 = vrot.slane %v1957_v30, 4 }
0x154e   :  { %v1958_v59 = vadd.f32 0.5, %v1956_v32 }
0x154f   :  { %1967 = vrot.lane.b32.xlu0 %v1963_v58, %s2794_s6 }
0x1550   :  { %v1960_v31 = vsel %vm223_vm9, %v2686_v57, %v1958_v59 }
0x1551   :  { %v1964_v55 = vrot.slane %v1960_v31, 4 }
0x1553   :  { %1969 = vrot.lane.b32.xlu1 %v1964_v55, %s2794_s6  ;;  %v1974_v60 = vrot.slane %v1964_v55, 4 }
0x1555   :  { %v1976_v61 = vmul.f32 %v1974_v60, %v1957_v30 }
0x1557   :  { %v1978_v51 = vrot.slane %v1976_v61, 4 }
0x15c1   :  { %v1968_v2 = vpop.permute.xlu0 %1967 }
0x15c5   :  { %v1970_v3 = vpop.permute.xlu1 %1969 }
0x15c6   :  { %v1971_v5 = vsel %vm1258_vm10, %v1968_v2, %v1970_v3  ;;  %v1972_v0 = vsel %vm1258_vm10, %v1970_v3, %v1968_v2 }
0x15c7   :  { %v1973_v25 = vmul.f32 %v1971_v5, %v1853_v23 }
0x15c9   :  { %v1980_v8 = vadd.f32 %v1978_v51, %v1973_v25 }
0x15cb   :  { %2687 = vtanh.f32 %v1980_v8 }
0x15d8   :  { %v2688_v13 = vpop.eup %2687 }
0x15d9   :  { %v1982_v34 = vmul.f32 %v2688_v13, %v1972_v0 }
0x15db   :  { %1983 = vst.msk [vmem:[#allocation3 + $0x6] sm:$0x3] %vm1266_vm11, %v1982_v34  ;;  %2387 = vmatmul.mubr.msk.f32.vlgmr.msra.gmra.mxu1 %vm1083_vm8, %v1982_v34 }
0x169b   :  { %v2053_v6 = vpop.f32.mrf.mxu1 }
0x169c   :  { %v2060_v37 = vrot.slane %v2053_v6, 2 }
0x169d   :  { %v2055_v10 = vpop.f32.mrf.mxu1 }
0x169e   :  { %v2064_v12 = vadd.f32 %v2060_v37, %v3330_v43  ;;  %v2061_v14 = vrot.slane %v2055_v10, 2  ;;  %v3401_v43 = vsub.s32 %v1387_v20, %v3152_v26 }
0x16a0   :  { %v2066_v46 = vmul.f32 0.5, %v2064_v12  ;;  %v2065_v63 = vadd.f32 %v2061_v14, %v3334_v48  ;;  %v1391_v21 = vrot.slane %v3244_v62, %v3401_v43  ;;  %v1636_v22 = vrot.slane %v3308_v39, %v3401_v43 }
0x16a1   :  { %v1863_v26 = vrot.slane %v3378_v28, %v3401_v43 }
0x16a2   :  { %2689 = vtanh.f32 %v2066_v46  ;;  %v2067_v44 = vmul.f32 0.5, %v2065_v63 }
0x16a4   :  { %v2069_v4 = vsel %vm223_vm9, %v2065_v63, %v2067_v44 }
0x16a5   :  { %2691 = vtanh.f32 %v2069_v4 }
0x16af   :  { %v2690_v15 = vpop.eup %2689 }
0x16b0   :  { %v2072_v17 = vmul.f32 0.5, %v2690_v15 }
0x16b2   :  { %v2692_v11 = vpop.eup %2691  ;;  %v2074_v16 = vadd.f32 0.5, %v2072_v17 }
0x16b3   :  { %v2073_v33 = vmul.f32 0.5, %v2692_v11 }
0x16b4   :  { %v2080_v18 = vrot.slane %v2074_v16, 6 }
0x16b5   :  { %v2075_v19 = vadd.f32 0.5, %v2073_v33 }
0x16b6   :  { %2084 = vrot.lane.b32.xlu0 %v2080_v18, %s2794_s6 }
0x16b7   :  { %v2077_v48 = vsel %vm223_vm9, %v2692_v11, %v2075_v19 }
0x16b8   :  { %v2081_v35 = vrot.slane %v2077_v48, 6 }
0x16ba   :  { %2086 = vrot.lane.b32.xlu1 %v2081_v35, %s2794_s6  ;;  %v2091_v40 = vrot.slane %v2081_v35, 2  ;;  %1392 = vrot.lane.b32.xlu0 %v1391_v21, %s2794_s6 }
0x16bc   :  { %v2093_v23 = vmul.f32 %v2091_v40, %v2074_v16 }
0x16be   :  { %1637 = vrot.lane.b32.xlu1 %v1636_v22, %s2794_s6  ;;  %1864 = vrot.lane.b32.xlu0 %v1863_v26, %s2794_s6  ;;  %v2095_v41 = vrot.slane %v2093_v23, 6 }
0x1728   :  { %v2085_v38 = vpop.permute.xlu0 %2084 }
0x172c   :  { %v2087_v24 = vpop.permute.xlu1 %2086  ;;  %v1393_v62 = vpop.permute.xlu0 %1392 }
0x172d   :  { %v2088_v27 = vsel %vm1258_vm10, %v2085_v38, %v2087_v24  ;;  %1396 = vst.msk [vmem:[#allocation3] sm:$0x3] %vm1395_vm12, %v1393_v62 }
0x172e   :  { %v2090_v29 = vmul.f32 %v2088_v27, %v1980_v8 }
0x1730   :  { %v2097_v39 = vadd.f32 %v2095_v41, %v2090_v29  ;;  %v1638_v47 = vpop.permute.xlu1 %1637  ;;  %v1865_v36 = vpop.permute.xlu0 %1864 }
0x1731   :  { %1640 = vst.msk [vmem:[#allocation3 + $0x2] sm:$0x3] %vm1395_vm12, %v1638_v47  ;;  %1867 = vst.msk [vmem:[#allocation3 + $0x4] sm:$0x3] %vm1395_vm12, %v1865_v36 }
0x1732   :  { %2693 = vtanh.f32 %v2097_v39 }
0x1733   :  { %2755 = shalt.err (!%p2752_p0)  }
0x1734   :  { %54 = dma.hbm_to_vmem [thread:$0]  %s3438_s3, 8192, %s52_s8, [#allocation5]  ;;  %v2089_v45 = vsel %vm1258_vm10, %v2087_v24, %v2085_v38 }
0x173f   :  { %v2694_v28 = vpop.eup %2693 }
0x1740   :  { %v2099_v49 = vmul.f32 %v2694_v28, %v2089_v45 }
0x1742   :  { %v2107_v50 = vrot.slane %v2099_v49, %v3401_v43 }
0x1744   :  { %2108 = vrot.lane.b32.xlu1 %v2107_v50, %s2794_s6 }
0x17b6   :  { %v2109_v52 = vpop.permute.xlu1 %2108 }
0x17b7   :  { %2111 = vst.msk [vmem:[#allocation3 + $0x6] sm:$0x3] %vm1395_vm12, %v2109_v52 }
0x17b8   :  { %2780 = dma.done.wait [#allocation5], 8192 }
0x17b9   :  { %2781 = vsyncadd [#allocation5], 4294959104  ;;  %v2147_v53 = vld [vmem:[#allocation4 + $0xf8] sm:$0xff]  ;;  %v2146_v30 = vld [vmem:[#allocation4 + $0xf0] sm:$0xff]  ;;  %s2797_s3 = smov [#allocation11]  }
0x17ba   :  { %v2179_v54 = vld [vmem:[#allocation4 + $0x1f8] sm:$0xff]  ;;  %2434 = vmatprep.subr.mxu0 %v2147_v53  ;;  %v2178_v32 = vld [vmem:[#allocation4 + $0x1f0] sm:$0xff]  ;;  %v2145_v59 = vld [vmem:[#allocation4 + $0xe8] sm:$0xff]  ;;  %s2353_s12 = sshll.u32 %s2797_s3, 4  ;;  %s2354_s12 = int_to_ptr.vmem [resolvable:$true] %s2353_s12 }
0x17bb   :  { %v2131_v56 = vld [vmem:[#allocation4 + $0x78] sm:$0xff]  ;;  %2469 = vmatprep.subr.mxu1 %v2179_v54  ;;  %v2130_v42 = vld [vmem:[#allocation4 + $0x70] sm:$0xff]  ;;  %v2177_v31 = vld [vmem:[#allocation4 + $0x1e8] sm:$0xff]  ;;  %s2756_s13 = scalar_lea.vmem %s2354_s12, 32  ;;  %p2761_p2 = scmp.lt.s32.totalorder %s2354_s12, %s2354_s12 }
0x17bc   :  { %v2163_v57 = vld [vmem:[#allocation4 + $0x178] sm:$0xff]  ;;  %2435 = vmatpush3.msra.mxu0 %v2131_v56  ;;  %v2162_v58 = vld [vmem:[#allocation4 + $0x170] sm:$0xff]  ;;  %v2129_v55 = vld [vmem:[#allocation4 + $0x68] sm:$0xff]  ;;  %p2757_p1 = scmp.ne.s32.totalorder %s2354_s12, %s2756_s13  ;;  %p2762_p3 = scmp.lt.s32.totalorder %s2756_s13, %s2756_s13 }
0x17bd   :  { %2470 = vmatpush3.msra.mxu1 %v2163_v57  ;;  %2436 = vmatprep.subr.mxu0 %v2146_v30  ;;  %v2161_v60 = vld [vmem:[#allocation4 + $0x168] sm:$0xff]  ;;  %v2144_v61 = vld [vmem:[#allocation4 + $0xe0] sm:$0xff]  ;;  %v2143_v25 = vld [vmem:[#allocation4 + $0xd8] sm:$0xff] }
0x17be   :  { %2471 = vmatprep.subr.mxu1 %v2178_v32  ;;  %2437 = vmatpush3.msra.mxu0 %v2130_v42  ;;  %v2176_v2 = vld [vmem:[#allocation4 + $0x1e0] sm:$0xff]  ;;  %v2175_v51 = vld [vmem:[#allocation4 + $0x1d8] sm:$0xff]  ;;  %v2142_v0 = vld [vmem:[#allocation4 + $0xd0] sm:$0xff]  ;;  %p2763_p4 = por %p2762_p3, %p2761_p2 }
0x17bf   :  { %2472 = vmatpush3.msra.mxu1 %v2162_v58  ;;  %2438 = vmatprep.subr.mxu0 %v2145_v59  ;;  %v2128_v3 = vld [vmem:[#allocation4 + $0x60] sm:$0xff]  ;;  %v2127_v8 = vld [vmem:[#allocation4 + $0x58] sm:$0xff]  ;;  %v2174_v34 = vld [vmem:[#allocation4 + $0x1d0] sm:$0xff] }
0x17c0   :  { %2473 = vmatprep.subr.mxu1 %v2177_v31  ;;  %v2160_v5 = vld [vmem:[#allocation4 + $0x160] sm:$0xff]  ;;  %2439 = vmatpush3.msra.mxu0 %v2129_v55  ;;  %v2159_v13 = vld [vmem:[#allocation4 + $0x158] sm:$0xff]  ;;  %v2126_v6 = vld [vmem:[#allocation4 + $0x50] sm:$0xff]  ;;  %p2764_p5 = pnand %p2763_p4, %p2757_p1 }
0x17c1   :  { %2474 = vmatpush3.msra.mxu1 %v2161_v60  ;;  %2440 = vmatprep.subr.mxu0 %v2144_v61  ;;  %v2158_v37 = vld [vmem:[#allocation4 + $0x150] sm:$0xff]  ;;  %v2141_v10 = vld [vmem:[#allocation4 + $0xc8] sm:$0xff]  ;;  %v2140_v63 = vld [vmem:[#allocation4 + $0xc0] sm:$0xff] }
0x17c2   :  { %2475 = vmatprep.subr.mxu1 %v2176_v2  ;;  %2441 = vmatpush3.msra.mxu0 %v2128_v3  ;;  %v2173_v12 = vld [vmem:[#allocation4 + $0x1c8] sm:$0xff]  ;;  %v2172_v44 = vld [vmem:[#allocation4 + $0x1c0] sm:$0xff]  ;;  %v2139_v9 = vld [vmem:[#allocation4 + $0xb8] sm:$0xff] }
0x17c3   :  { %2476 = vmatpush3.msra.mxu1 %v2160_v5  ;;  %2442 = vmatprep.subr.mxu0 %v2143_v25  ;;  %v2125_v14 = vld [vmem:[#allocation4 + $0x48] sm:$0xff]  ;;  %v2124_v4 = vld [vmem:[#allocation4 + $0x40] sm:$0xff]  ;;  %v2171_v15 = vld [vmem:[#allocation4 + $0x1b8] sm:$0xff] }
0x17c4   :  { %2477 = vmatprep.subr.mxu1 %v2175_v51  ;;  %2443 = vmatpush3.msra.mxu0 %v2127_v8  ;;  %v2157_v46 = vld [vmem:[#allocation4 + $0x148] sm:$0xff]  ;;  %v2156_v7 = vld [vmem:[#allocation4 + $0x140] sm:$0xff]  ;;  %v2123_v17 = vld [vmem:[#allocation4 + $0x38] sm:$0xff] }
0x17c5   :  { %2478 = vmatpush3.msra.mxu1 %v2159_v13  ;;  %2444 = vmatprep.subr.mxu0 %v2142_v0  ;;  %v2155_v20 = vld [vmem:[#allocation4 + $0x138] sm:$0xff]  ;;  %v2138_v11 = vld [vmem:[#allocation4 + $0xb0] sm:$0xff]  ;;  %v2137_v19 = vld [vmem:[#allocation4 + $0xa8] sm:$0xff] }
0x17c6   :  { %2479 = vmatprep.subr.mxu1 %v2174_v34  ;;  %2445 = vmatpush3.msra.mxu0 %v2126_v6  ;;  %v2170_v16 = vld [vmem:[#allocation4 + $0x1b0] sm:$0xff]  ;;  %v2169_v48 = vld [vmem:[#allocation4 + $0x1a8] sm:$0xff]  ;;  %v2136_v40 = vld [vmem:[#allocation4 + $0xa0] sm:$0xff] }
0x17c7   :  { %2480 = vmatpush3.msra.mxu1 %v2158_v37  ;;  %2446 = vmatprep.subr.mxu0 %v2141_v10  ;;  %v2122_v33 = vld [vmem:[#allocation4 + $0x30] sm:$0xff]  ;;  %v2121_v35 = vld [vmem:[#allocation4 + $0x28] sm:$0xff]  ;;  %v2168_v22 = vld [vmem:[#allocation4 + $0x1a0] sm:$0xff] }
0x17c8   :  { %2481 = vmatprep.subr.mxu1 %v2173_v12  ;;  %2447 = vmatpush3.msra.mxu0 %v2125_v14  ;;  %v2154_v18 = vld [vmem:[#allocation4 + $0x130] sm:$0xff]  ;;  %v2153_v21 = vld [vmem:[#allocation4 + $0x128] sm:$0xff]  ;;  %v2120_v26 = vld [vmem:[#allocation4 + $0x20] sm:$0xff] }
0x17c9   :  { %2482 = vmatpush3.msra.mxu1 %v2157_v46  ;;  %2448 = vmatprep.subr.mxu0 %v2140_v63  ;;  %v2152_v23 = vld [vmem:[#allocation4 + $0x120] sm:$0xff]  ;;  %v2115_v38 = vld [vmem:[#allocation3] sm:$0xff]  ;;  %v2134_v39 = vld [vmem:[#allocation4 + $0x90] sm:$0xff] }
0x17ca   :  { %2483 = vmatprep.subr.mxu1 %v2172_v44  ;;  %2449 = vmatpush3.msra.mxu0 %v2124_v4  ;;  %v2135_v24 = vld [vmem:[#allocation4 + $0x98] sm:$0xff]  ;;  %v2185_v27 = vcombine.high %v2115_v38, %v2115_v38  ;;  %v2166_v47 = vld [vmem:[#allocation4 + $0x190] sm:$0xff]  ;;  %v2192_v36 = vrot.slane %v2115_v38, %v3401_v43  ;;  %v2133_v50 = vld [vmem:[#allocation4 + $0x88] sm:$0xff] }
0x17cb   :  { %2484 = vmatpush3.msra.mxu1 %v2156_v7  ;;  %2450 = vmatprep.subr.mxu0 %v2139_v9  ;;  %v2167_v62 = vld [vmem:[#allocation4 + $0x198] sm:$0xff]  ;;  %v2118_v28 = vld [vmem:[#allocation4 + $0x10] sm:$0xff]  ;;  %v2165_v52 = vld [vmem:[#allocation4 + $0x188] sm:$0xff] }
0x17cc   :  { %2485 = vmatprep.subr.mxu1 %v2171_v15  ;;  %2451 = vmatpush3.msra.mxu0 %v2123_v17  ;;  %v2119_v29 = vld [vmem:[#allocation4 + $0x18] sm:$0xff]  ;;  %v2150_v45 = vld [vmem:[#allocation4 + $0x110] sm:$0xff]  ;;  %v2199_v49 = vrot.slane %v2185_v27, %v3401_v43  ;;  %v2117_v53 = vld [vmem:[#allocation4 + $0x8] sm:$0xff]  ;;  %v2200_v30 = vcombine.high %v2192_v36, %v2192_v36 }
0x17cd   :  { %2486 = vmatpush3.msra.mxu1 %v2155_v20  ;;  %2452 = vmatprep.subr.mxu0 %v2138_v11  ;;  %v2151_v41 = vld [vmem:[#allocation4 + $0x118] sm:$0xff]  ;;  %v2149_v54 = vld [vmem:[#allocation4 + $0x108] sm:$0xff]  ;;  %v2132_v56 = vld [vmem:[#allocation4 + $0x80] sm:$0xff] }
0x17ce   :  { %2487 = vmatprep.subr.mxu1 %v2170_v16  ;;  %2453 = vmatpush3.msra.mxu0 %v2122_v33  ;;  %v2164_v57 = vld [vmem:[#allocation4 + $0x180] sm:$0xff]  ;;  %v2201_v42 = vcombine.high %v2199_v49, %v2199_v49 }
0x17cf   :  { %2488 = vmatpush3.msra.mxu1 %v2154_v18  ;;  %2454 = vmatprep.subr.mxu0 %v2137_v19  ;;  %v2116_v32 = vld [vmem:[#allocation4] sm:$0xff] }
0x17d0   :  { %2489 = vmatprep.subr.mxu1 %v2169_v48  ;;  %2455 = vmatpush3.msra.mxu0 %v2121_v35  ;;  %v2148_v43 = vld [vmem:[#allocation4 + $0x100] sm:$0xff] }
0x17d1   :  { %2490 = vmatpush3.msra.mxu1 %v2153_v21  ;;  %2456 = vmatprep.subr.mxu0 %v2136_v40 }
0x17d2   :  { %2491 = vmatprep.subr.mxu1 %v2168_v22  ;;  %2457 = vmatpush3.msra.mxu0 %v2120_v26 }
0x17d3   :  { %2492 = vmatpush3.msra.mxu1 %v2152_v23  ;;  %2458 = vmatprep.subr.mxu0 %v2135_v24 }
0x17d4   :  { %2493 = vmatprep.subr.mxu1 %v2167_v62  ;;  %2459 = vmatpush3.msra.mxu0 %v2119_v29 }
0x17d5   :  { %2494 = vmatpush3.msra.mxu1 %v2151_v41  ;;  %2460 = vmatprep.subr.mxu0 %v2134_v39 }
0x17d6   :  { %2495 = vmatprep.subr.mxu1 %v2166_v47  ;;  %2461 = vmatpush3.msra.mxu0 %v2118_v28 }
0x17d7   :  { %2496 = vmatpush3.msra.mxu1 %v2150_v45  ;;  %2462 = vmatprep.subr.mxu0 %v2133_v50 }
0x17d8   :  { %2497 = vmatprep.subr.mxu1 %v2165_v52  ;;  %2463 = vmatpush3.msra.mxu0 %v2117_v53 }
0x17d9   :  { %2498 = vmatpush3.msra.mxu1 %v2149_v54  ;;  %2464 = vmatprep.subr.mxu0 %v2132_v56 }
0x17da   :  { %2499 = vmatprep.subr.mxu1 %v2164_v57  ;;  %2465 = vmatpush3.msra.mxu0 %v2116_v32 }
0x17db   :  { %2270 = vmatprep.mubr.f32.mxu0 %v2200_v30  ;;  %2500 = vmatpush3.msra.mxu1 %v2148_v43 }
0x17dc   :  { %2340 = vmatprep.mubr.f32.mxu1 %v2201_v42  ;;  %2271 = vmatmul.mubr.f32.vlgmr.msra.gmra.mxu0 %v2192_v36 }
0x17dd   :  { %2341 = vmatmul.mubr.f32.vlgmr.msra.gmra.mxu1 %v2199_v49 }
0x189c   :  { %v2466_v58 = vpop.f32.mrf.mxu0 }
0x189d   :  { %v2501_v59 = vpop.f32.mrf.mxu1 }
0x189e   :  { %v2467_v31 = vpop.f32.mrf.mxu0 }
0x189f   :  { %v2502_v55 = vpop.f32.mrf.mxu1  ;;  %v2468_v60 = vadd.f32 %v2467_v31, %v2466_v58 }
0x18a0   :  { %v2503_v2 = vadd.f32 %v2502_v55, %v2501_v59 }
0x18a1   :  { %v2273_v61 = vadd.f32 %v2468_v60, %v2832_v1 }
0x18a3   :  { %v2343_v3 = vadd.f32 %v2503_v2, %v2273_v61 }
0x18a5   :  { %2346 = vst [vmem:[#allocation11] sm:$0x3] %v2343_v3 }
0x18a6   :  { %2767 = shalt.err (!%p2764_p5)
}
0x18a7   :  { %2356 = dma.vmem_to_hbm [thread:$0]  %s2354_s12, 32, %s3439_s4, [#allocation8]  }
0x18a8   :  { %2782 = dma.done.wait [#allocation8], 32  }
0x18a9   :  { %2783 = vsyncadd [#allocation8], 4294967264 }
0x18aa   :  { %2360 = vsyncpa [#allocation7], 1 }
0x18ab   :  { %2361 = vsyncpa [#allocation10], 1 }
0x18ac   :  { %2362 = vsyncpa [#allocation8], 1 }
0x18ad   :  { %2363 = vsyncmov [#allocation5] }
0x18b0   :  { %s2364_s16 = vpop.sfrf %2363 }
0x18b1   :  { %p2389_p6 = scmp.ne.s32.totalorder %s2364_s16, 0 }
0x18b3   :  { %2368 = shalt.err (%p2389_p6)  }

</bundles_post_ra>
